<compile_context>
chip_gen: v7x
topology: tpu7x:2x2x1
jax: 0.10.0
libtpu: 0.0.40
codegen_flags: <defaults>
</compile_context>

<pallas_src>
import functools

import jax
import jax.numpy as jnp
from jax.experimental import pallas as pl
from jax.experimental.pallas import tpu as pltpu

LANES = 128


def _round_up(x, m):
    return ((x + m - 1) // m) * m


def _pad2d(w, rows, cols):
    out = jnp.zeros((rows, cols), w.dtype)
    return out.at[: w.shape[0], : w.shape[1]].set(w)


# ----------------------------------------------------------------------------
# Fused backbone + RPN-head kernel (normalization folded into first matmul)
# ----------------------------------------------------------------------------
def _backbone_rpn_kernel(x_ref, w1_ref, b1_ref, w2_ref, b2_ref,
                         wr_ref, br_ref, wh_ref, bh_ref,
                         feat_ref, rpn_ref):
    # bf16 matmul inputs, f32 accumulation; bias/ReLU epilogues in f32.
    x = x_ref[...].astype(jnp.bfloat16)
    h = jnp.dot(x, w1_ref[...], preferred_element_type=jnp.float32) + b1_ref[...]
    h = jnp.maximum(h, 0.0)
    f = jnp.dot(h.astype(jnp.bfloat16), w2_ref[...],
                preferred_element_type=jnp.float32) + b2_ref[...]
    f = jnp.maximum(f, 0.0)
    r = jnp.dot(f.astype(jnp.bfloat16), wr_ref[...],
                preferred_element_type=jnp.float32) + br_ref[...]
    r = jnp.maximum(r, 0.0)
    head = jnp.dot(r.astype(jnp.bfloat16), wh_ref[...],
                   preferred_element_type=jnp.float32) + bh_ref[...]
    feat_ref[...] = f.astype(feat_ref.dtype)     # bf16 features for ROI pooling
    rpn_ref[...] = head                          # f32 objectness + deltas (lane-dense 128)


def backbone_rpn(x_flat, p, *, tm):
    Mp, Cin = x_flat.shape
    Fp = p["w2"].shape[1]
    full2 = lambda i: (0, 0)
    feat, rpn = pl.pallas_call(
        _backbone_rpn_kernel,
        out_shape=(jax.ShapeDtypeStruct((Mp, Fp), jnp.bfloat16),
                   jax.ShapeDtypeStruct((Mp, LANES), jnp.float32)),
        grid=(Mp // tm,),
        in_specs=[
            pl.BlockSpec((tm, Cin), lambda i: (i, 0)),
            pl.BlockSpec(p["w1"].shape, full2),
            pl.BlockSpec(p["b1"].shape, full2),
            pl.BlockSpec(p["w2"].shape, full2),
            pl.BlockSpec(p["b2"].shape, full2),
            pl.BlockSpec(p["wr"].shape, full2),
            pl.BlockSpec(p["br"].shape, full2),
            pl.BlockSpec(p["wh"].shape, full2),
            pl.BlockSpec(p["bh"].shape, full2),
        ],
        out_specs=[
            pl.BlockSpec((tm, Fp), lambda i: (i, 0)),
            pl.BlockSpec((tm, LANES), lambda i: (i, 0)),
        ],
        compiler_params=pltpu.CompilerParams(
            dimension_semantics=("parallel",),          # both v7x TensorCores get M tiles
            vmem_limit_bytes=32 * 1024 * 1024),         # safe on v5e/v6e/v7x
    )(x_flat, p["w1"], p["b1"], p["w2"], p["b2"],
      p["wr"], p["br"], p["wh"], p["bh"])
    return feat, rpn


# ----------------------------------------------------------------------------
# Fused ROI-heads kernel: mask-pool (MXU) + FC1 + FC2 + concatenated predictors
# ----------------------------------------------------------------------------
def _roi_heads_kernel(boxes_ref, cx_ref, cy_ref, feat_ref,
                      w1_ref, b1_ref, w2_ref, b2_ref, wh_ref, bh_ref,
                      out_ref):
    boxes = boxes_ref[0]                              # (P, 4) f32
    cx = cx_ref[...]                                  # (1, HW) cell-center x
    cy = cy_ref[...]                                  # (1, HW) cell-center y
    x1, y1 = boxes[:, 0:1], boxes[:, 1:2]
    x2, y2 = boxes[:, 2:3], boxes[:, 3:4]
    # TODO(synk): true ROIAlign uses bilinear sub-bin sampling; approximated by a
    # cell-center membership mask so the gather becomes a dense MXU matmul.
    mask = ((cx >= x1) & (cx <= x2) & (cy >= y1) & (cy <= y2)).astype(jnp.float32)  # (P, HW)
    area = jnp.maximum(jnp.sum(mask, axis=-1, keepdims=True), 1.0)
    pooled = jnp.dot(mask.astype(jnp.bfloat16), feat_ref[0],
                     preferred_element_type=jnp.float32)
    pooled = pooled * pl.reciprocal(area, approx=True)
    z = jnp.dot(pooled.astype(jnp.bfloat16), w1_ref[...],
                preferred_element_type=jnp.float32) + b1_ref[...]
    z = jnp.maximum(z, 0.0)
    z = jnp.dot(z.astype(jnp.bfloat16), w2_ref[...],
                preferred_element_type=jnp.float32) + b2_ref[...]
    z = jnp.maximum(z, 0.0)
    out = jnp.dot(z.astype(jnp.bfloat16), wh_ref[...],
                  preferred_element_type=jnp.float32) + bh_ref[...]
    out_ref[0] = out                                  # (P, 128): [cls | 4*cls box regr | pad]


def roi_heads(proposals, feat_b, p, *, H, W):
    B, P, _ = proposals.shape
    _, HW, Fp = feat_b.shape
    ar = jnp.arange(H * W, dtype=jnp.int32)
    cx = (ar % W).astype(jnp.float32)[None, :] + 0.5
    cy = (ar // W).astype(jnp.float32)[None, :] + 0.5
    full2 = lambda b: (0, 0)
    out = pl.pallas_call(
        _roi_heads_kernel,
        out_shape=jax.ShapeDtypeStruct((B, P, LANES), jnp.float32),
        grid=(B,),
        in_specs=[
            pl.BlockSpec((1, P, 4), lambda b: (b, 0, 0)),
            pl.BlockSpec((1, HW), full2),
            pl.BlockSpec((1, HW), full2),
            pl.BlockSpec((1, HW, Fp), lambda b: (b, 0, 0)),
            pl.BlockSpec(p["fc1"].shape, full2),
            pl.BlockSpec(p["fb1"].shape, full2),
            pl.BlockSpec(p["fc2"].shape, full2),
            pl.BlockSpec(p["fb2"].shape, full2),
            pl.BlockSpec(p["hw_"].shape, full2),
            pl.BlockSpec(p["hb"].shape, full2),
        ],
        out_specs=pl.BlockSpec((1, P, LANES), lambda b: (b, 0, 0)),
        compiler_params=pltpu.CompilerParams(
            dimension_semantics=("parallel",),
            vmem_limit_bytes=32 * 1024 * 1024),
    )(proposals, cx, cy, feat_b, p["fc1"], p["fb1"], p["fc2"], p["fb2"],
      p["hw_"], p["hb"])
    return out


# ----------------------------------------------------------------------------
# Plain-JAX glue (anchors, box arithmetic, data-dependent selection)
# ----------------------------------------------------------------------------
def make_anchors(H, W, sizes):
    ys = jnp.arange(H, dtype=jnp.float32) + 0.5
    xs = jnp.arange(W, dtype=jnp.float32) + 0.5
    cy, cx = jnp.meshgrid(ys, xs, indexing="ij")
    cy = cy.reshape(H * W, 1)
    cx = cx.reshape(H * W, 1)
    half = jnp.asarray(sizes, jnp.float32).reshape(1, -1) / 2.0
    anchors = jnp.stack([cx - half, cy - half, cx + half, cy + half], axis=-1)  # (HW, A, 4)
    return anchors.reshape(H * W * len(sizes), 4)


def decode_boxes(deltas, boxes):
    w = boxes[..., 2] - boxes[..., 0]
    h = boxes[..., 3] - boxes[..., 1]
    cx = boxes[..., 0] + 0.5 * w
    cy = boxes[..., 1] + 0.5 * h
    dx, dy = deltas[..., 0], deltas[..., 1]
    dw = jnp.minimum(deltas[..., 2], 4.135)   # torchvision bbox_xform_clip = log(1000/16)
    dh = jnp.minimum(deltas[..., 3], 4.135)
    pcx = dx * w + cx
    pcy = dy * h + cy
    pw = jnp.exp(dw) * w
    ph = jnp.exp(dh) * h
    return jnp.stack(
        [pcx - 0.5 * pw, pcy - 0.5 * ph, pcx + 0.5 * pw, pcy + 0.5 * ph], axis=-1)


def clip_boxes(boxes, H, W):
    x1 = jnp.clip(boxes[..., 0], 0.0, float(W))
    y1 = jnp.clip(boxes[..., 1], 0.0, float(H))
    x2 = jnp.clip(boxes[..., 2], 0.0, float(W))
    y2 = jnp.clip(boxes[..., 3], 0.0, float(H))
    return jnp.stack([x1, y1, x2, y2], axis=-1)


# ----------------------------------------------------------------------------
# The model
# ----------------------------------------------------------------------------
class GeneralizedRCNNPallas:
    def __init__(self, key, feat_dim=32, hidden_dim=64, num_classes=5,
                 anchor_sizes=(4.0, 8.0, 16.0), num_proposals=8):
        self.feat_dim = feat_dim
        self.hidden_dim = hidden_dim
        self.num_classes = num_classes
        self.anchor_sizes = anchor_sizes
        self.num_anchors = len(anchor_sizes)
        self.num_proposals = num_proposals
        A, NC = self.num_anchors, num_classes
        assert 5 * A <= LANES and 5 * NC <= LANES

        Fp = _round_up(feat_dim, LANES)     # lane-dense feature width
        Hp = _round_up(hidden_dim, LANES)   # lane-dense hidden width
        self.Fp, self.Hp = Fp, Hp

        def lin(k, cin, cout, scale=0.1):
            kw, kb = jax.random.split(k)
            return (scale * jax.random.normal(kw, (cin, cout), jnp.float32),
                    scale * jax.random.normal(kb, (cout,), jnp.float32))

        keys = jax.random.split(key, 9)
        # transform (GeneralizedRCNNTransform) params
        self.image_mean = jnp.asarray([0.485, 0.456, 0.406], jnp.float32)
        self.image_std = jnp.asarray([0.229, 0.224, 0.225], jnp.float32)
        # backbone: two 1x1 convs (channel matmuls), ReLU
        bb_w1, bb_b1 = lin(keys[0], 3, feat_dim)
        bb_w2, bb_b2 = lin(keys[1], feat_dim, feat_dim)
        # rpn head: shared conv + objectness + bbox deltas
        rpn_w, rpn_b = lin(keys[2], feat_dim, feat_dim)
        rpn_cls_w, rpn_cls_b = lin(keys[3], feat_dim, A)
        rpn_box_w, rpn_box_b = lin(keys[4], feat_dim, 4 * A)
        # roi_heads: two-layer box head + class / box predictors
        fc1_w, fc1_b = lin(keys[5], feat_dim, hidden_dim)
        fc2_w, fc2_b = lin(keys[6], hidden_dim, hidden_dim)
        cls_w, cls_b = lin(keys[7], hidden_dim, NC)
        boxp_w, boxp_b = lin(keys[8], hidden_dim, 4 * NC)

        # Fold normalization into the first conv: ((x-mean)/std)@w1+b1 == x@(w1/std) + (b1-(mean/std)@w1)
        inv_std = 1.0 / self.image_std
        w1f = bb_w1 * inv_std[:, None]
        b1f = bb_b1 - (self.image_mean * inv_std) @ bb_w1

        def wpad(w, rows, cols):
            return _pad2d(w, rows, cols).astype(jnp.bfloat16)

        def bpad(b, cols):
            return _pad2d(b.reshape(1, -1), 1, cols).astype(jnp.float32)

        # fused backbone + RPN params (zero-padded to lane-dense widths, bf16 weights)
        self.bk = {
            "w1": wpad(w1f, 3, Fp), "b1": bpad(b1f, Fp),
            "w2": wpad(bb_w2, Fp, Fp), "b2": bpad(bb_b2, Fp),
            "wr": wpad(rpn_w, Fp, Fp), "br": bpad(rpn_b, Fp),
            "wh": wpad(jnp.concatenate([rpn_cls_w, rpn_box_w], axis=1), Fp, LANES),
            "bh": bpad(jnp.concatenate([rpn_cls_b, rpn_box_b]), LANES),
        }
        # fused roi_heads params
        self.rh = {
            "fc1": wpad(fc1_w, Fp, Hp), "fb1": bpad(fc1_b, Hp),
            "fc2": wpad(fc2_w, Hp, Hp), "fb2": bpad(fc2_b, Hp),
            "hw_": wpad(jnp.concatenate([cls_w, boxp_w], axis=1), Hp, LANES),
            "hb": bpad(jnp.concatenate([cls_b, boxp_b]), LANES),
        }

    @staticmethod
    def _pick_tm(M):
        if M >= 2048:
            return 512
        if M >= 512:
            return 256
        return max(8, _round_up(M, 8))

    def __call__(self, images):
        # images: (B, 3, H, W) NCHW float32 (list-of-tensors collapsed to a batch)
        B, C, H, W = images.shape
        original_image_sizes = [(H, W)] * B
        A, P, NC, Fp = self.num_anchors, self.num_proposals, self.num_classes, self.Fp

        # --- transform: normalize folded into first backbone matmul; resize identity ---
        # TODO(synk): GeneralizedRCNNTransform resize/batching is skipped (identity).
        M = B * H * W
        x_flat = jnp.transpose(images, (0, 2, 3, 1)).reshape(M, C)
        tm = self._pick_tm(M)
        Mp = _round_up(M, tm)
        if Mp != M:                              # pad once, slice once at the end
            x_flat = jnp.pad(x_flat, ((0, Mp - M), (0, 0)))

        # --- fused backbone + RPN heads (single Pallas kernel) --------------------------
        feat_p, rpn_p = backbone_rpn(x_flat, self.bk, tm=tm)
        feat = feat_p[:M]                        # (M, Fp) bf16
        rpn = rpn_p[:M]                          # (M, 128) f32: [obj(A) | deltas(4A) | pad]

        obj = rpn[:, :A].reshape(B, H * W * A)
        deltas = rpn[:, A:5 * A].reshape(B, H * W * A, 4)
        anchors = make_anchors(H, W, self.anchor_sizes)
        # TODO(synk): RPN NMS omitted; proposals are plain per-image top-k by objectness.
        _, topi = jax.lax.top_k(obj, P)                                 # (B, P)
        sel_deltas = jnp.take_along_axis(
            deltas, jnp.broadcast_to(topi[:, :, None], (B, P, 4)), axis=1)
        sel_anchors = anchors[topi]                                     # (B, P, 4)
        proposals = clip_boxes(decode_boxes(sel_deltas, sel_anchors), H, W)

        # --- fused roi_heads: ROI pool + box head + predictors (single Pallas kernel) ---
        feat_b = feat.reshape(B, H * W, Fp)
        head = roi_heads(proposals, feat_b, self.rh, H=H, W=W)          # (B, P, 128)
        cls_logits = head[..., :NC]
        box_regr = head[..., NC:NC + 4 * NC].reshape(B, P, NC, 4)

        probs = jax.nn.softmax(cls_logits, axis=-1)
        scores = probs[..., 1:].max(-1)                                 # drop background
        labels = probs[..., 1:].argmax(-1).astype(jnp.int32) + 1
        sel_regr = jnp.take_along_axis(
            box_regr,
            jnp.broadcast_to(labels[:, :, None, None], (B, P, 1, 4)), axis=2)[:, :, 0, :]
        det_boxes = clip_boxes(decode_boxes(sel_regr, proposals), H, W)
        # TODO(synk): per-class NMS + score thresholding in roi_heads.postprocess omitted.

        # --- transform.postprocess: rescale to original image sizes ---------------------
        detections = []
        for b in range(B):
            oh, ow = original_image_sizes[b]
            ratios = jnp.asarray([ow / W, oh / H, ow / W, oh / H], jnp.float32)
            detections.append({
                "boxes": det_boxes[b] * ratios,
                "scores": scores[b],
                "labels": labels[b],
            })
        # eval mode -> eager_outputs returns detections (losses = {} with no targets)
        return detections


if __name__ == "__main__":
    key = jax.random.PRNGKey(0)
    images = jax.random.uniform(key, (2, 3, 16, 16), dtype=jnp.float32)  # batch of 2 RGB 16x16
    model = GeneralizedRCNNPallas(jax.random.PRNGKey(0))
    forward = jax.jit(model.__call__)
    detections = forward(images)
    jax.block_until_ready(detections)
    assert detections[0]["boxes"].shape == (8, 4)
    assert detections[0]["scores"].shape == (8,)
    assert detections[0]["labels"].shape == (8,)
    print("KERNEL_OK")
</pallas_src>

<mosaic_0001>
module attributes {stable_mosaic.version = 11 : i64} {
  func.func @_backbone_rpn_kernel(%arg0: i32, %arg1: memref<256x3xf32, #tpu.memory_space<vmem>>, %arg2: memref<3x128xbf16, #tpu.memory_space<vmem>>, %arg3: memref<1x128xf32, #tpu.memory_space<vmem>>, %arg4: memref<128x128xbf16, #tpu.memory_space<vmem>>, %arg5: memref<1x128xf32, #tpu.memory_space<vmem>>, %arg6: memref<128x128xbf16, #tpu.memory_space<vmem>>, %arg7: memref<1x128xf32, #tpu.memory_space<vmem>>, %arg8: memref<128x128xbf16, #tpu.memory_space<vmem>>, %arg9: memref<1x128xf32, #tpu.memory_space<vmem>>, %arg10: memref<256x128xbf16, #tpu.memory_space<vmem>>, %arg11: memref<256x128xf32, #tpu.memory_space<vmem>>) attributes {dimension_semantics = [#tpu.dimension_semantics<parallel>], iteration_bounds = array<i64: 2>, scalar_prefetch = 0 : i64, scratch_operands = 0 : i64, tpu.core_type = #tpu.core_type<tc>, window_params = [{transform_indices = @transform_0, window_bounds = array<i64: 256, 3>}, {pipeline_mode = #tpu.pipeline_mode<synchronous>, transform_indices = @transform_1, window_bounds = array<i64: 3, 128>}, {pipeline_mode = #tpu.pipeline_mode<synchronous>, transform_indices = @transform_2, window_bounds = array<i64: 1, 128>}, {pipeline_mode = #tpu.pipeline_mode<synchronous>, transform_indices = @transform_3, window_bounds = array<i64: 128, 128>}, {pipeline_mode = #tpu.pipeline_mode<synchronous>, transform_indices = @transform_4, window_bounds = array<i64: 1, 128>}, {pipeline_mode = #tpu.pipeline_mode<synchronous>, transform_indices = @transform_5, window_bounds = array<i64: 128, 128>}, {pipeline_mode = #tpu.pipeline_mode<synchronous>, transform_indices = @transform_6, window_bounds = array<i64: 1, 128>}, {pipeline_mode = #tpu.pipeline_mode<synchronous>, transform_indices = @transform_7, window_bounds = array<i64: 128, 128>}, {pipeline_mode = #tpu.pipeline_mode<synchronous>, transform_indices = @transform_8, window_bounds = array<i64: 1, 128>}, {transform_indices = @transform_9, window_bounds = array<i64: 256, 128>}, {transform_indices = @transform_10, window_bounds = array<i64: 256, 128>}]} {
    %c0 = arith.constant 0 : index
    %c0_0 = arith.constant 0 : index
    %0 = vector.load %arg1[%c0, %c0_0] : memref<256x3xf32, #tpu.memory_space<vmem>>, vector<256x3xf32>
    %1 = arith.truncf %0 : vector<256x3xf32> to vector<256x3xbf16>
    %c0_1 = arith.constant 0 : index
    %c0_2 = arith.constant 0 : index
    %2 = vector.load %arg2[%c0_1, %c0_2] : memref<3x128xbf16, #tpu.memory_space<vmem>>, vector<3x128xbf16>
    %cst = arith.constant dense<0.000000e+00> : vector<256x128xf32>
    %3 = tpu.matmul %1, %2, %cst {dimension_numbers = #tpu.dot_dimension_numbers<[1], [0], [0], [1], [0, 0, 1, 1], [], []>} : vector<256x3xbf16>, vector<3x128xbf16>, vector<256x128xf32> -> vector<256x128xf32>
    %c0_3 = arith.constant 0 : index
    %c0_4 = arith.constant 0 : index
    %4 = vector.load %arg3[%c0_3, %c0_4] : memref<1x128xf32, #tpu.memory_space<vmem>>, vector<1x128xf32>
    %5 = vector.broadcast %4 : vector<1x128xf32> to vector<256x128xf32>
    %6 = arith.addf %3, %5 : vector<256x128xf32>
    %cst_5 = arith.constant 0.000000e+00 : f32
    %7 = vector.broadcast %cst_5 : f32 to vector<256x128xf32>
    %8 = arith.maximumf %6, %7 : vector<256x128xf32>
    %9 = arith.truncf %8 : vector<256x128xf32> to vector<256x128xbf16>
    %c0_6 = arith.constant 0 : index
    %c0_7 = arith.constant 0 : index
    %10 = vector.load %arg4[%c0_6, %c0_7] : memref<128x128xbf16, #tpu.memory_space<vmem>>, vector<128x128xbf16>
    %cst_8 = arith.constant dense<0.000000e+00> : vector<256x128xf32>
    %11 = tpu.matmul %9, %10, %cst_8 {dimension_numbers = #tpu.dot_dimension_numbers<[1], [0], [0], [1], [0, 0, 1, 1], [], []>} : vector<256x128xbf16>, vector<128x128xbf16>, vector<256x128xf32> -> vector<256x128xf32>
    %c0_9 = arith.constant 0 : index
    %c0_10 = arith.constant 0 : index
    %12 = vector.load %arg5[%c0_9, %c0_10] : memref<1x128xf32, #tpu.memory_space<vmem>>, vector<1x128xf32>
    %13 = vector.broadcast %12 : vector<1x128xf32> to vector<256x128xf32>
    %14 = arith.addf %11, %13 : vector<256x128xf32>
    %cst_11 = arith.constant 0.000000e+00 : f32
    %15 = vector.broadcast %cst_11 : f32 to vector<256x128xf32>
    %16 = arith.maximumf %14, %15 : vector<256x128xf32>
    %17 = arith.truncf %16 : vector<256x128xf32> to vector<256x128xbf16>
    %c0_12 = arith.constant 0 : index
    %c0_13 = arith.constant 0 : index
    %18 = vector.load %arg6[%c0_12, %c0_13] : memref<128x128xbf16, #tpu.memory_space<vmem>>, vector<128x128xbf16>
    %cst_14 = arith.constant dense<0.000000e+00> : vector<256x128xf32>
    %19 = tpu.matmul %17, %18, %cst_14 {dimension_numbers = #tpu.dot_dimension_numbers<[1], [0], [0], [1], [0, 0, 1, 1], [], []>} : vector<256x128xbf16>, vector<128x128xbf16>, vector<256x128xf32> -> vector<256x128xf32>
    %c0_15 = arith.constant 0 : index
    %c0_16 = arith.constant 0 : index
    %20 = vector.load %arg7[%c0_15, %c0_16] : memref<1x128xf32, #tpu.memory_space<vmem>>, vector<1x128xf32>
    %21 = vector.broadcast %20 : vector<1x128xf32> to vector<256x128xf32>
    %22 = arith.addf %19, %21 : vector<256x128xf32>
    %cst_17 = arith.constant 0.000000e+00 : f32
    %23 = vector.broadcast %cst_17 : f32 to vector<256x128xf32>
    %24 = arith.maximumf %22, %23 : vector<256x128xf32>
    %25 = arith.truncf %24 : vector<256x128xf32> to vector<256x128xbf16>
    %c0_18 = arith.constant 0 : index
    %c0_19 = arith.constant 0 : index
    %26 = vector.load %arg8[%c0_18, %c0_19] : memref<128x128xbf16, #tpu.memory_space<vmem>>, vector<128x128xbf16>
    %cst_20 = arith.constant dense<0.000000e+00> : vector<256x128xf32>
    %27 = tpu.matmul %25, %26, %cst_20 {dimension_numbers = #tpu.dot_dimension_numbers<[1], [0], [0], [1], [0, 0, 1, 1], [], []>} : vector<256x128xbf16>, vector<128x128xbf16>, vector<256x128xf32> -> vector<256x128xf32>
    %c0_21 = arith.constant 0 : index
    %c0_22 = arith.constant 0 : index
    %28 = vector.load %arg9[%c0_21, %c0_22] : memref<1x128xf32, #tpu.memory_space<vmem>>, vector<1x128xf32>
    %29 = vector.broadcast %28 : vector<1x128xf32> to vector<256x128xf32>
    %30 = arith.addf %27, %29 : vector<256x128xf32>
    %31 = arith.truncf %16 : vector<256x128xf32> to vector<256x128xbf16>
    %c0_23 = arith.constant 0 : index
    %c0_24 = arith.constant 0 : index
    %32 = vector.load %arg10[%c0_23, %c0_24] : memref<256x128xbf16, #tpu.memory_space<vmem>>, vector<256x128xbf16>
    tpu.vector_store %arg10[%c0_23, %c0_24], %31 {strides = array<i32>} : memref<256x128xbf16, #tpu.memory_space<vmem>>, vector<256x128xbf16>,
    %c0_25 = arith.constant 0 : index
    %c0_26 = arith.constant 0 : index
    %33 = vector.load %arg11[%c0_25, %c0_26] : memref<256x128xf32, #tpu.memory_space<vmem>>, vector<256x128xf32>
    tpu.vector_store %arg11[%c0_25, %c0_26], %30 {strides = array<i32>} : memref<256x128xf32, #tpu.memory_space<vmem>>, vector<256x128xf32>,
    return
  }
  func.func @transform_0(%arg0: i32) -> (i32, i32) {
    %c0_i32 = arith.constant 0 : i32
    %c0_i32_0 = arith.constant 0 : i32
    return %arg0, %c0_i32 : i32, i32
  }
  func.func @transform_1(%arg0: i32) -> (i32, i32) {
    %c0_i32 = arith.constant 0 : i32
    %c0_i32_0 = arith.constant 0 : i32
    %c0_i32_1 = arith.constant 0 : i32
    return %c0_i32, %c0_i32_0 : i32, i32
  }
  func.func @transform_2(%arg0: i32) -> (i32, i32) {
    %c0_i32 = arith.constant 0 : i32
    %c0_i32_0 = arith.constant 0 : i32
    %c0_i32_1 = arith.constant 0 : i32
    return %c0_i32, %c0_i32_0 : i32, i32
  }
  func.func @transform_3(%arg0: i32) -> (i32, i32) {
    %c0_i32 = arith.constant 0 : i32
    %c0_i32_0 = arith.constant 0 : i32
    %c0_i32_1 = arith.constant 0 : i32
    return %c0_i32, %c0_i32_0 : i32, i32
  }
  func.func @transform_4(%arg0: i32) -> (i32, i32) {
    %c0_i32 = arith.constant 0 : i32
    %c0_i32_0 = arith.constant 0 : i32
    %c0_i32_1 = arith.constant 0 : i32
    return %c0_i32, %c0_i32_0 : i32, i32
  }
  func.func @transform_5(%arg0: i32) -> (i32, i32) {
    %c0_i32 = arith.constant 0 : i32
    %c0_i32_0 = arith.constant 0 : i32
    %c0_i32_1 = arith.constant 0 : i32
    return %c0_i32, %c0_i32_0 : i32, i32
  }
  func.func @transform_6(%arg0: i32) -> (i32, i32) {
    %c0_i32 = arith.constant 0 : i32
    %c0_i32_0 = arith.constant 0 : i32
    %c0_i32_1 = arith.constant 0 : i32
    return %c0_i32, %c0_i32_0 : i32, i32
  }
  func.func @transform_7(%arg0: i32) -> (i32, i32) {
    %c0_i32 = arith.constant 0 : i32
    %c0_i32_0 = arith.constant 0 : i32
    %c0_i32_1 = arith.constant 0 : i32
    return %c0_i32, %c0_i32_0 : i32, i32
  }
  func.func @transform_8(%arg0: i32) -> (i32, i32) {
    %c0_i32 = arith.constant 0 : i32
    %c0_i32_0 = arith.constant 0 : i32
    %c0_i32_1 = arith.constant 0 : i32
    return %c0_i32, %c0_i32_0 : i32, i32
  }
  func.func @transform_9(%arg0: i32) -> (i32, i32) {
    %c0_i32 = arith.constant 0 : i32
    %c0_i32_0 = arith.constant 0 : i32
    return %arg0, %c0_i32 : i32, i32
  }
  func.func @transform_10(%arg0: i32) -> (i32, i32) {
    %c0_i32 = arith.constant 0 : i32
    %c0_i32_0 = arith.constant 0 : i32
    return %arg0, %c0_i32 : i32, i32
  }
}

module attributes {stable_mosaic.version = 11 : i64} {
  func.func @_roi_heads_kernel(%arg0: i32, %arg1: memref<1x8x4xf32, #tpu.memory_space<vmem>>, %arg2: memref<1x256xf32, #tpu.memory_space<vmem>>, %arg3: memref<1x256xf32, #tpu.memory_space<vmem>>, %arg4: memref<1x256x128xbf16, #tpu.memory_space<vmem>>, %arg5: memref<128x128xbf16, #tpu.memory_space<vmem>>, %arg6: memref<1x128xf32, #tpu.memory_space<vmem>>, %arg7: memref<128x128xbf16, #tpu.memory_space<vmem>>, %arg8: memref<1x128xf32, #tpu.memory_space<vmem>>, %arg9: memref<128x128xbf16, #tpu.memory_space<vmem>>, %arg10: memref<1x128xf32, #tpu.memory_space<vmem>>, %arg11: memref<1x8x128xf32, #tpu.memory_space<vmem>>) attributes {dimension_semantics = [#tpu.dimension_semantics<parallel>], iteration_bounds = array<i64: 2>, scalar_prefetch = 0 : i64, scratch_operands = 0 : i64, tpu.core_type = #tpu.core_type<tc>, window_params = [{transform_indices = @transform_0, window_bounds = array<i64: 1, 8, 4>}, {pipeline_mode = #tpu.pipeline_mode<synchronous>, transform_indices = @transform_1, window_bounds = array<i64: 1, 256>}, {pipeline_mode = #tpu.pipeline_mode<synchronous>, transform_indices = @transform_2, window_bounds = array<i64: 1, 256>}, {transform_indices = @transform_3, window_bounds = array<i64: 1, 256, 128>}, {pipeline_mode = #tpu.pipeline_mode<synchronous>, transform_indices = @transform_4, window_bounds = array<i64: 128, 128>}, {pipeline_mode = #tpu.pipeline_mode<synchronous>, transform_indices = @transform_5, window_bounds = array<i64: 1, 128>}, {pipeline_mode = #tpu.pipeline_mode<synchronous>, transform_indices = @transform_6, window_bounds = array<i64: 128, 128>}, {pipeline_mode = #tpu.pipeline_mode<synchronous>, transform_indices = @transform_7, window_bounds = array<i64: 1, 128>}, {pipeline_mode = #tpu.pipeline_mode<synchronous>, transform_indices = @transform_8, window_bounds = array<i64: 128, 128>}, {pipeline_mode = #tpu.pipeline_mode<synchronous>, transform_indices = @transform_9, window_bounds = array<i64: 1, 128>}, {transform_indices = @transform_10, window_bounds = array<i64: 1, 8, 128>}]} {
    %c0 = arith.constant 0 : index
    %c0_0 = arith.constant 0 : index
    %c0_1 = arith.constant 0 : index
    %0 = vector.load %arg1[%c0, %c0_0, %c0_1] : memref<1x8x4xf32, #tpu.memory_space<vmem>>, vector<1x8x4xf32>
    %1 = vector.shape_cast %0 : vector<1x8x4xf32> to vector<8x4xf32>
    %c0_2 = arith.constant 0 : index
    %c0_3 = arith.constant 0 : index
    %2 = vector.load %arg2[%c0_2, %c0_3] : memref<1x256xf32, #tpu.memory_space<vmem>>, vector<1x256xf32>
    %c0_4 = arith.constant 0 : index
    %c0_5 = arith.constant 0 : index
    %3 = vector.load %arg3[%c0_4, %c0_5] : memref<1x256xf32, #tpu.memory_space<vmem>>, vector<1x256xf32>
    %4 = vector.extract_strided_slice %1 {offsets = [0, 0], sizes = [8, 1], strides = [1, 1]} : vector<8x4xf32> to vector<8x1xf32>
    %5 = vector.extract_strided_slice %1 {offsets = [0, 1], sizes = [8, 1], strides = [1, 1]} : vector<8x4xf32> to vector<8x1xf32>
    %6 = vector.extract_strided_slice %1 {offsets = [0, 2], sizes = [8, 1], strides = [1, 1]} : vector<8x4xf32> to vector<8x1xf32>
    %7 = vector.extract_strided_slice %1 {offsets = [0, 3], sizes = [8, 1], strides = [1, 1]} : vector<8x4xf32> to vector<8x1xf32>
    %8 = vector.broadcast %2 : vector<1x256xf32> to vector<8x256xf32>
    %9 = vector.broadcast %4 : vector<8x1xf32> to vector<8x256xf32>
    %10 = arith.cmpf oge, %8, %9 : vector<8x256xf32>
    %11 = vector.broadcast %2 : vector<1x256xf32> to vector<8x256xf32>
    %12 = vector.broadcast %6 : vector<8x1xf32> to vector<8x256xf32>
    %13 = arith.cmpf ole, %11, %12 : vector<8x256xf32>
    %14 = arith.andi %10, %13 : vector<8x256xi1>
    %15 = vector.broadcast %3 : vector<1x256xf32> to vector<8x256xf32>
    %16 = vector.broadcast %5 : vector<8x1xf32> to vector<8x256xf32>
    %17 = arith.cmpf oge, %15, %16 : vector<8x256xf32>
    %18 = arith.andi %14, %17 : vector<8x256xi1>
    %19 = vector.broadcast %3 : vector<1x256xf32> to vector<8x256xf32>
    %20 = vector.broadcast %7 : vector<8x1xf32> to vector<8x256xf32>
    %21 = arith.cmpf ole, %19, %20 : vector<8x256xf32>
    %22 = arith.andi %18, %21 : vector<8x256xi1>
    %23 = arith.extui %22 : vector<8x256xi1> to vector<8x256xi32>
    %24 = arith.sitofp %23 : vector<8x256xi32> to vector<8x256xf32>
    %cst = arith.constant dense<0.000000e+00> : vector<8xf32>
    %25 = vector.multi_reduction <add>, %24, %cst [1] : vector<8x256xf32> to vector<8xf32>
    %26 = vector.shape_cast %25 : vector<8xf32> to vector<8x1xf32>
    %cst_6 = arith.constant 1.000000e+00 : f32
    %27 = vector.broadcast %cst_6 : f32 to vector<8x1xf32>
    %28 = arith.maximumf %26, %27 : vector<8x1xf32>
    %29 = arith.truncf %24 : vector<8x256xf32> to vector<8x256xbf16>
    %c0_7 = arith.constant 0 : index
    %c0_8 = arith.constant 0 : index
    %c0_9 = arith.constant 0 : index
    %30 = vector.load %arg4[%c0_7, %c0_8, %c0_9] : memref<1x256x128xbf16, #tpu.memory_space<vmem>>, vector<1x256x128xbf16>
    %31 = vector.shape_cast %30 : vector<1x256x128xbf16> to vector<256x128xbf16>
    %cst_10 = arith.constant dense<0.000000e+00> : vector<8x128xf32>
    %32 = tpu.matmul %29, %31, %cst_10 {dimension_numbers = #tpu.dot_dimension_numbers<[1], [0], [0], [1], [0, 0, 1, 1], [], []>} : vector<8x256xbf16>, vector<256x128xbf16>, vector<8x128xf32> -> vector<8x128xf32>
    %33 = tpu.reciprocal %28 {approx = true} : vector<8x1xf32> -> vector<8x1xf32>
    %34 = vector.broadcast %33 : vector<8x1xf32> to vector<8x128xf32>
    %35 = arith.mulf %32, %34 : vector<8x128xf32>
    %36 = arith.truncf %35 : vector<8x128xf32> to vector<8x128xbf16>
    %c0_11 = arith.constant 0 : index
    %c0_12 = arith.constant 0 : index
    %37 = vector.load %arg5[%c0_11, %c0_12] : memref<128x128xbf16, #tpu.memory_space<vmem>>, vector<128x128xbf16>
    %cst_13 = arith.constant dense<0.000000e+00> : vector<8x128xf32>
    %38 = tpu.matmul %36, %37, %cst_13 {dimension_numbers = #tpu.dot_dimension_numbers<[1], [0], [0], [1], [0, 0, 1, 1], [], []>} : vector<8x128xbf16>, vector<128x128xbf16>, vector<8x128xf32> -> vector<8x128xf32>
    %c0_14 = arith.constant 0 : index
    %c0_15 = arith.constant 0 : index
    %39 = vector.load %arg6[%c0_14, %c0_15] : memref<1x128xf32, #tpu.memory_space<vmem>>, vector<1x128xf32>
    %40 = vector.broadcast %39 : vector<1x128xf32> to vector<8x128xf32>
    %41 = arith.addf %38, %40 : vector<8x128xf32>
    %cst_16 = arith.constant 0.000000e+00 : f32
    %42 = vector.broadcast %cst_16 : f32 to vector<8x128xf32>
    %43 = arith.maximumf %41, %42 : vector<8x128xf32>
    %44 = arith.truncf %43 : vector<8x128xf32> to vector<8x128xbf16>
    %c0_17 = arith.constant 0 : index
    %c0_18 = arith.constant 0 : index
    %45 = vector.load %arg7[%c0_17, %c0_18] : memref<128x128xbf16, #tpu.memory_space<vmem>>, vector<128x128xbf16>
    %cst_19 = arith.constant dense<0.000000e+00> : vector<8x128xf32>
    %46 = tpu.matmul %44, %45, %cst_19 {dimension_numbers = #tpu.dot_dimension_numbers<[1], [0], [0], [1], [0, 0, 1, 1], [], []>} : vector<8x128xbf16>, vector<128x128xbf16>, vector<8x128xf32> -> vector<8x128xf32>
    %c0_20 = arith.constant 0 : index
    %c0_21 = arith.constant 0 : index
    %47 = vector.load %arg8[%c0_20, %c0_21] : memref<1x128xf32, #tpu.memory_space<vmem>>, vector<1x128xf32>
    %48 = vector.broadcast %47 : vector<1x128xf32> to vector<8x128xf32>
    %49 = arith.addf %46, %48 : vector<8x128xf32>
    %cst_22 = arith.constant 0.000000e+00 : f32
    %50 = vector.broadcast %cst_22 : f32 to vector<8x128xf32>
    %51 = arith.maximumf %49, %50 : vector<8x128xf32>
    %52 = arith.truncf %51 : vector<8x128xf32> to vector<8x128xbf16>
    %c0_23 = arith.constant 0 : index
    %c0_24 = arith.constant 0 : index
    %53 = vector.load %arg9[%c0_23, %c0_24] : memref<128x128xbf16, #tpu.memory_space<vmem>>, vector<128x128xbf16>
    %cst_25 = arith.constant dense<0.000000e+00> : vector<8x128xf32>
    %54 = tpu.matmul %52, %53, %cst_25 {dimension_numbers = #tpu.dot_dimension_numbers<[1], [0], [0], [1], [0, 0, 1, 1], [], []>} : vector<8x128xbf16>, vector<128x128xbf16>, vector<8x128xf32> -> vector<8x128xf32>
    %c0_26 = arith.constant 0 : index
    %c0_27 = arith.constant 0 : index
    %55 = vector.load %arg10[%c0_26, %c0_27] : memref<1x128xf32, #tpu.memory_space<vmem>>, vector<1x128xf32>
    %56 = vector.broadcast %55 : vector<1x128xf32> to vector<8x128xf32>
    %57 = arith.addf %54, %56 : vector<8x128xf32>
    %c0_28 = arith.constant 0 : index
    %c0_29 = arith.constant 0 : index
    %c0_30 = arith.constant 0 : index
    %58 = vector.load %arg11[%c0_28, %c0_29, %c0_30] : memref<1x8x128xf32, #tpu.memory_space<vmem>>, vector<1x8x128xf32>
    %59 = vector.shape_cast %58 : vector<1x8x128xf32> to vector<8x128xf32>
    %60 = vector.shape_cast %57 : vector<8x128xf32> to vector<1x8x128xf32>
    tpu.vector_store %arg11[%c0_28, %c0_29, %c0_30], %60 {strides = array<i32>} : memref<1x8x128xf32, #tpu.memory_space<vmem>>, vector<1x8x128xf32>,
    return
  }
  func.func @transform_0(%arg0: i32) -> (i32, i32, i32) {
    %c0_i32 = arith.constant 0 : i32
    %c0_i32_0 = arith.constant 0 : i32
    %c0_i32_1 = arith.constant 0 : i32
    return %arg0, %c0_i32, %c0_i32_0 : i32, i32, i32
  }
  func.func @transform_1(%arg0: i32) -> (i32, i32) {
    %c0_i32 = arith.constant 0 : i32
    %c0_i32_0 = arith.constant 0 : i32
    %c0_i32_1 = arith.constant 0 : i32
    return %c0_i32, %c0_i32_0 : i32, i32
  }
  func.func @transform_2(%arg0: i32) -> (i32, i32) {
    %c0_i32 = arith.constant 0 : i32
    %c0_i32_0 = arith.constant 0 : i32
    %c0_i32_1 = arith.constant 0 : i32
    return %c0_i32, %c0_i32_0 : i32, i32
  }
  func.func @transform_3(%arg0: i32) -> (i32, i32, i32) {
    %c0_i32 = arith.constant 0 : i32
    %c0_i32_0 = arith.constant 0 : i32
    %c0_i32_1 = arith.constant 0 : i32
    return %arg0, %c0_i32, %c0_i32_0 : i32, i32, i32
  }
  func.func @transform_4(%arg0: i32) -> (i32, i32) {
    %c0_i32 = arith.constant 0 : i32
    %c0_i32_0 = arith.constant 0 : i32
    %c0_i32_1 = arith.constant 0 : i32
    return %c0_i32, %c0_i32_0 : i32, i32
  }
  func.func @transform_5(%arg0: i32) -> (i32, i32) {
    %c0_i32 = arith.constant 0 : i32
    %c0_i32_0 = arith.constant 0 : i32
    %c0_i32_1 = arith.constant 0 : i32
    return %c0_i32, %c0_i32_0 : i32, i32
  }
  func.func @transform_6(%arg0: i32) -> (i32, i32) {
    %c0_i32 = arith.constant 0 : i32
    %c0_i32_0 = arith.constant 0 : i32
    %c0_i32_1 = arith.constant 0 : i32
    return %c0_i32, %c0_i32_0 : i32, i32
  }
  func.func @transform_7(%arg0: i32) -> (i32, i32) {
    %c0_i32 = arith.constant 0 : i32
    %c0_i32_0 = arith.constant 0 : i32
    %c0_i32_1 = arith.constant 0 : i32
    return %c0_i32, %c0_i32_0 : i32, i32
  }
  func.func @transform_8(%arg0: i32) -> (i32, i32) {
    %c0_i32 = arith.constant 0 : i32
    %c0_i32_0 = arith.constant 0 : i32
    %c0_i32_1 = arith.constant 0 : i32
    return %c0_i32, %c0_i32_0 : i32, i32
  }
  func.func @transform_9(%arg0: i32) -> (i32, i32) {
    %c0_i32 = arith.constant 0 : i32
    %c0_i32_0 = arith.constant 0 : i32
    %c0_i32_1 = arith.constant 0 : i32
    return %c0_i32, %c0_i32_0 : i32, i32
  }
  func.func @transform_10(%arg0: i32) -> (i32, i32, i32) {
    %c0_i32 = arith.constant 0 : i32
    %c0_i32_0 = arith.constant 0 : i32
    %c0_i32_1 = arith.constant 0 : i32
    return %arg0, %c0_i32, %c0_i32_0 : i32, i32, i32
  }
}

</mosaic_0001>

<bundles_post_ra>
// kernel: custom-call
= control target key start
LH: loop header
LB: loop body
LE: loop exit
PB: predicated region body
PF: predicated region fallthrough
CT: control target
= control target key end

     0   :  { %5 = vsyncpa [#allocation9], 0  ;;  %v1086_v0 = vmov 2147483648   ;;  %v1087_v1 = vmov 2147483647   ;;  %s1221_s0 = inlined_call_operand.vmem [shape: f32[2,768], index: 0, kind: input, shape index: {}]   ;;  %s1222_s1 = inlined_call_operand.hbm [shape: f32[2,8], index: 1, kind: output, shape index: {0}]   ;;  %s1223_s2 = inlined_call_operand.vmem [shape: s32[2,8], index: 2, kind: output, shape index: {1}]  }
   0x1   :  { %7 = vst [vmem:[#allocation12] sm:$0xff] %v1086_v0  ;;  %8 = vst [vmem:[#allocation14] sm:$0xff] %v1087_v1 }
   0x2   :  { %v1022_v2 = vld [vmem:[%s1221_s0 + $0x8] sm:$0xf]  ;;  %v43_v3 = vlaneseq  ;;  %v27_v4 = vld [vmem:[%s1221_s0] sm:$0xff]  ;;  %v1088_v5 = vmov 2147483648   ;;  %v1089_v6 = vmov 2147483647  }
   0x3   :  { %39 = vst [vmem:[#allocation16 + $0x8] sm:$0xf] %v1022_v2  ;;  %84 = vst [vmem:[#allocation13] sm:$0xff] %v1088_v5  ;;  %v54_v10 = vsub.s32 2147483647, %v27_v4  ;;  %vm53_vm0 = vcmp.lt.s32.totalorder %v27_v4, 0 }
   0x4   :  { %85 = vst [vmem:[#allocation15] sm:$0xff] %v1089_v6  ;;  %v1118_v7 = vshrl.u32 %v43_v3, 7  ;;  %v44_v8 = vand.u32 127, %v43_v3  ;;  %s1122_s0 = smov 0  }
   0x5   :  { %v55_v13 = vsel %vm53_vm0, %v54_v10, %v27_v4 }
   0x6   :  { %v47_v9 = vshrl.u32 %v1118_v7, 1 }
   0x8   :  { %v49_v11 = vmul.u32 128, %v47_v9 }
   0xa   :  { %v50_v12 = vadd.s32 %v49_v11, %v44_v8  ;;  %v61_v14 = vld [vmem:[#allocation16 + $0x8] sm:$0xff] }
   0xb   :  { %vm62_vm1 = vcmp.lt.s32.totalorder %v61_v14, 0  ;;  %v63_v15 = vsub.s32 2147483647, %v61_v14 }
   0xc   :  { %vm57_vm2 = vcmp.lt.s32.totalorder %v50_v12, 768  ;;  %v65_v16 = vadd.s32 512, %v50_v12  ;;  %79 = vst [vmem:[#allocation17] sm:$0xff] %v50_v12 }
   0xd   :  { %v58_v17 = vsel %vm57_vm2, %v55_v13, 2147483648  ;;  %v64_v18 = vsel %vm62_vm1, %v63_v15, %v61_v14 }
   0xe   :  { %59 = vst [vmem:[#allocation16] sm:$0xff] %v58_v17  ;;  %vm66_vm3 = vcmp.lt.s32.totalorder %v65_v16, 768  ;;  %82 = vst [vmem:[#allocation17 + $0x8] sm:$0xff] %v65_v16 }
   0xf   :  { %v67_v19 = vsel %vm66_vm3, %v64_v18, 2147483648 }
  0x10   :  { %68 = vst [vmem:[#allocation16 + $0x8] sm:$0xff] %v67_v19 }
  0x11 LB: > { %s419_s13 = scalar_lea.vmem [#allocation13], %s1084_s0  ;;  %s421_s14 = scalar_lea.vmem [#allocation15], %s1084_s0  ;;  %s1084_s0 = sphi %s1122_s0, %s92_s0  }
  0x12   : > { %s92_s0 = sadd.s32 1, %s1084_s0  }
  0x13   : > { %v94_v21 = vld [vmem:[#allocation17] sm:$0xff]  ;;  %p89_p2 = scmp.ge.s32.totalorder %s92_s0, 8  }
  0x14   :  { %s1095_s0 = smov (%p89_p2), [#allocation8]  }
  0x15   : > { %v93_v20 = vld [vmem:[#allocation16] sm:$0xff]  ;;  %v99_v23 = vld [vmem:[#allocation17 + $0x8] sm:$0xff] }
  0x16   : > { %vm103_vm6 = vcmp.lt.s32.totalorder %v99_v23, %v94_v21 }
  0x17   : > { %v97_v22 = vld [vmem:[#allocation16 + $0x8] sm:$0xff] }
  0x18   : > { %vm101_vm4 = vcmp.gt.s32.totalorder %v97_v22, %v93_v20  ;;  %vm102_vm5 = vcmp.eq.s32.totalorder %v97_v22, %v93_v20 }
  0x19   : > { %vm104_vm7 = vmand %vm102_vm5, %vm103_vm6 }
  0x1a   : > { %vm105_vm8 = vmor %vm101_vm4, %vm104_vm7 }
  0x1b   : > { %v106_v24 = vsel %vm105_vm8, %v97_v22, %v93_v20  ;;  %v107_v25 = vsel %vm105_vm8, %v99_v23, %v94_v21 }
  0x1c   : > { %v109_v26 = vrot.slane %v106_v24, 2  ;;  %v110_v27 = vrot.slane %v107_v25, 2 }
  0x1e   : > { %vm112_vm9 = vcmp.gt.s32.totalorder %v109_v26, %v106_v24  ;;  %vm113_vm10 = vcmp.eq.s32.totalorder %v109_v26, %v106_v24  ;;  %vm114_vm11 = vcmp.lt.s32.totalorder %v110_v27, %v107_v25 }
  0x1f   : > { %vm115_vm12 = vmand %vm113_vm10, %vm114_vm11 }
  0x20   : > { %vm116_vm13 = vmor %vm112_vm9, %vm115_vm12 }
  0x21   : > { %v117_v28 = vsel %vm116_vm13, %v109_v26, %v106_v24  ;;  %v118_v29 = vsel %vm116_vm13, %v110_v27, %v107_v25 }
  0x22   : > { %v120_v30 = vrot.slane %v117_v28, 2  ;;  %v121_v31 = vrot.slane %v118_v29, 2 }
  0x24   : > { %vm123_vm14 = vcmp.gt.s32.totalorder %v120_v30, %v117_v28  ;;  %vm124_vm15 = vcmp.eq.s32.totalorder %v120_v30, %v117_v28  ;;  %vm125_vm0 = vcmp.lt.s32.totalorder %v121_v31, %v118_v29 }
  0x25   : > { %vm126_vm1 = vmand %vm124_vm15, %vm125_vm0 }
  0x26   : > { %vm127_vm2 = vmor %vm123_vm14, %vm126_vm1 }
  0x27   : > { %v128_v32 = vsel %vm127_vm2, %v120_v30, %v117_v28  ;;  %v129_v33 = vsel %vm127_vm2, %v121_v31, %v118_v29 }
  0x28   : > { %v131_v34 = vrot.slane %v128_v32, 2  ;;  %v132_v35 = vrot.slane %v129_v33, 2 }
  0x2a   : > { %vm134_vm3 = vcmp.gt.s32.totalorder %v131_v34, %v128_v32  ;;  %vm135_vm4 = vcmp.eq.s32.totalorder %v131_v34, %v128_v32  ;;  %vm136_vm5 = vcmp.lt.s32.totalorder %v132_v35, %v129_v33 }
  0x2b   : > { %vm137_vm6 = vmand %vm135_vm4, %vm136_vm5 }
  0x2c   : > { %vm138_vm7 = vmor %vm134_vm3, %vm137_vm6 }
  0x2d   : > { %v140_v36 = vsel %vm138_vm7, %v132_v35, %v129_v33  ;;  %v139_v37 = vsel %vm138_vm7, %v131_v34, %v128_v32 }
  0x2e   : > { %174 = vxpose.xlu1.b32.start [1/16] %v140_v36, 128  ;;  %142 = vxpose.xlu0.b32.start [1/16] %v139_v37, 128 }
  0x32   : > { %175 = vxpose.xlu1.b32.cont [2/16] %v140_v36, 128  ;;  %143 = vxpose.xlu0.b32.cont [2/16] %v139_v37, 128 }
  0x36   : > { %176 = vxpose.xlu1.b32.cont [3/16] %v140_v36, 128  ;;  %144 = vxpose.xlu0.b32.cont [3/16] %v139_v37, 128 }
  0x3a   : > { %177 = vxpose.xlu1.b32.cont [4/16] %v140_v36, 128  ;;  %145 = vxpose.xlu0.b32.cont [4/16] %v139_v37, 128 }
  0x3e   : > { %178 = vxpose.xlu1.b32.cont [5/16] %v140_v36, 128  ;;  %146 = vxpose.xlu0.b32.cont [5/16] %v139_v37, 128 }
  0x42   : > { %179 = vxpose.xlu1.b32.cont [6/16] %v140_v36, 128  ;;  %147 = vxpose.xlu0.b32.cont [6/16] %v139_v37, 128 }
  0x46   : > { %180 = vxpose.xlu1.b32.cont [7/16] %v140_v36, 128  ;;  %148 = vxpose.xlu0.b32.cont [7/16] %v139_v37, 128 }
  0x4a   : > { %181 = vxpose.xlu1.b32.cont [8/16] %v140_v36, 128  ;;  %149 = vxpose.xlu0.b32.cont [8/16] %v139_v37, 128 }
  0x4e   : > { %182 = vxpose.xlu1.b32.cont [9/16] %v140_v36, 128  ;;  %150 = vxpose.xlu0.b32.cont [9/16] %v139_v37, 128 }
  0x52   : > { %183 = vxpose.xlu1.b32.cont [10/16] %v140_v36, 128  ;;  %151 = vxpose.xlu0.b32.cont [10/16] %v139_v37, 128 }
  0x56   : > { %184 = vxpose.xlu1.b32.cont [11/16] %v140_v36, 128  ;;  %152 = vxpose.xlu0.b32.cont [11/16] %v139_v37, 128 }
  0x5a   : > { %185 = vxpose.xlu1.b32.cont [12/16] %v140_v36, 128  ;;  %153 = vxpose.xlu0.b32.cont [12/16] %v139_v37, 128 }
  0x5e   : > { %186 = vxpose.xlu1.b32.cont [13/16] %v140_v36, 128  ;;  %154 = vxpose.xlu0.b32.cont [13/16] %v139_v37, 128 }
  0x62   : > { %187 = vxpose.xlu1.b32.cont [14/16] %v140_v36, 128  ;;  %155 = vxpose.xlu0.b32.cont [14/16] %v139_v37, 128 }
  0x66   : > { %188 = vxpose.xlu1.b32.cont [15/16] %v140_v36, 128  ;;  %156 = vxpose.xlu0.b32.cont [15/16] %v139_v37, 128 }
  0x6a   : > { %189 = vxpose.xlu1.b32.end [16/16] %v140_v36, 128  ;;  %157 = vxpose.xlu0.b32.end [16/16] %v139_v37, 128 }
  0xae   : > { %v190_v38 = vpop.trf.xlu1  ;;  %v158_v39 = vpop.trf.xlu0 }
  0xb2   : > { %v191_v40 = vpop.trf.xlu1  ;;  %v159_v41 = vpop.trf.xlu0 }
  0xb3   : > { %vm210_vm8 = vcmp.lt.s32.totalorder %v191_v40, %v190_v38  ;;  %vm208_vm9 = vcmp.gt.s32.totalorder %v159_v41, %v158_v39  ;;  %vm209_vm10 = vcmp.eq.s32.totalorder %v159_v41, %v158_v39 }
  0xb4   : > { %vm211_vm11 = vmand %vm209_vm10, %vm210_vm8 }
  0xb5   : > { %vm212_vm12 = vmor %vm208_vm9, %vm211_vm11 }
  0xb6   : > { %v213_v42 = vsel %vm212_vm12, %v159_v41, %v158_v39  ;;  %v192_v43 = vpop.trf.xlu1  ;;  %v214_v44 = vsel %vm212_vm12, %v191_v40, %v190_v38  ;;  %v160_v45 = vpop.trf.xlu0 }
  0xb7   : > { %vm219_vm13 = vcmp.lt.s32.totalorder %v192_v43, %v214_v44  ;;  %vm217_vm14 = vcmp.gt.s32.totalorder %v160_v45, %v213_v42  ;;  %vm218_vm15 = vcmp.eq.s32.totalorder %v160_v45, %v213_v42 }
  0xb8   : > { %vm220_vm0 = vmand %vm218_vm15, %vm219_vm13 }
  0xb9   : > { %vm221_vm1 = vmor %vm217_vm14, %vm220_vm0 }
  0xba   : > { %v222_v46 = vsel %vm221_vm1, %v160_v45, %v213_v42  ;;  %v193_v47 = vpop.trf.xlu1  ;;  %v223_v48 = vsel %vm221_vm1, %v192_v43, %v214_v44  ;;  %v161_v49 = vpop.trf.xlu0 }
  0xbb   : > { %vm228_vm2 = vcmp.lt.s32.totalorder %v193_v47, %v223_v48  ;;  %vm226_vm3 = vcmp.gt.s32.totalorder %v161_v49, %v222_v46  ;;  %vm227_vm4 = vcmp.eq.s32.totalorder %v161_v49, %v222_v46 }
  0xbc   : > { %vm229_vm5 = vmand %vm227_vm4, %vm228_vm2 }
  0xbd   : > { %vm230_vm6 = vmor %vm226_vm3, %vm229_vm5 }
  0xbe   : > { %v231_v50 = vsel %vm230_vm6, %v161_v49, %v222_v46  ;;  %v194_v51 = vpop.trf.xlu1  ;;  %v232_v52 = vsel %vm230_vm6, %v193_v47, %v223_v48  ;;  %v162_v53 = vpop.trf.xlu0 }
  0xbf   : > { %vm237_vm7 = vcmp.lt.s32.totalorder %v194_v51, %v232_v52  ;;  %vm235_vm8 = vcmp.gt.s32.totalorder %v162_v53, %v231_v50  ;;  %vm236_vm9 = vcmp.eq.s32.totalorder %v162_v53, %v231_v50 }
  0xc0   : > { %vm238_vm10 = vmand %vm236_vm9, %vm237_vm7 }
  0xc1   : > { %vm239_vm11 = vmor %vm235_vm8, %vm238_vm10 }
  0xc2   : > { %v240_v54 = vsel %vm239_vm11, %v162_v53, %v231_v50  ;;  %v195_v55 = vpop.trf.xlu1  ;;  %v241_v56 = vsel %vm239_vm11, %v194_v51, %v232_v52  ;;  %v163_v57 = vpop.trf.xlu0 }
  0xc3   : > { %vm246_vm12 = vcmp.lt.s32.totalorder %v195_v55, %v241_v56  ;;  %vm244_vm13 = vcmp.gt.s32.totalorder %v163_v57, %v240_v54  ;;  %vm245_vm14 = vcmp.eq.s32.totalorder %v163_v57, %v240_v54 }
  0xc4   : > { %vm247_vm15 = vmand %vm245_vm14, %vm246_vm12 }
  0xc5   : > { %vm248_vm0 = vmor %vm244_vm13, %vm247_vm15 }
  0xc6   : > { %v249_v58 = vsel %vm248_vm0, %v163_v57, %v240_v54  ;;  %v196_v59 = vpop.trf.xlu1  ;;  %v250_v60 = vsel %vm248_vm0, %v195_v55, %v241_v56  ;;  %v164_v61 = vpop.trf.xlu0 }
  0xc7   : > { %vm255_vm1 = vcmp.lt.s32.totalorder %v196_v59, %v250_v60  ;;  %vm253_vm2 = vcmp.gt.s32.totalorder %v164_v61, %v249_v58  ;;  %vm254_vm3 = vcmp.eq.s32.totalorder %v164_v61, %v249_v58 }
  0xc8   : > { %vm256_vm4 = vmand %vm254_vm3, %vm255_vm1 }
  0xc9   : > { %vm257_vm5 = vmor %vm253_vm2, %vm256_vm4 }
  0xca   : > { %v258_v62 = vsel %vm257_vm5, %v164_v61, %v249_v58  ;;  %v197_v63 = vpop.trf.xlu1  ;;  %v259_v0 = vsel %vm257_vm5, %v196_v59, %v250_v60  ;;  %v165_v1 = vpop.trf.xlu0 }
  0xcb   : > { %vm264_vm6 = vcmp.lt.s32.totalorder %v197_v63, %v259_v0  ;;  %vm262_vm7 = vcmp.gt.s32.totalorder %v165_v1, %v258_v62  ;;  %vm263_vm8 = vcmp.eq.s32.totalorder %v165_v1, %v258_v62 }
  0xcc   : > { %vm265_vm9 = vmand %vm263_vm8, %vm264_vm6 }
  0xcd   : > { %vm266_vm10 = vmor %vm262_vm7, %vm265_vm9 }
  0xce   : > { %v267_v2 = vsel %vm266_vm10, %v165_v1, %v258_v62  ;;  %v198_v4 = vpop.trf.xlu1  ;;  %v268_v5 = vsel %vm266_vm10, %v197_v63, %v259_v0  ;;  %v166_v6 = vpop.trf.xlu0 }
  0xcf   : > { %vm273_vm11 = vcmp.lt.s32.totalorder %v198_v4, %v268_v5  ;;  %vm271_vm12 = vcmp.gt.s32.totalorder %v166_v6, %v267_v2  ;;  %vm272_vm13 = vcmp.eq.s32.totalorder %v166_v6, %v267_v2 }
  0xd0   : > { %vm274_vm14 = vmand %vm272_vm13, %vm273_vm11 }
  0xd1   : > { %vm275_vm15 = vmor %vm271_vm12, %vm274_vm14 }
  0xd2   : > { %v276_v8 = vsel %vm275_vm15, %v166_v6, %v267_v2  ;;  %v199_v9 = vpop.trf.xlu1  ;;  %v277_v10 = vsel %vm275_vm15, %v198_v4, %v268_v5  ;;  %v167_v11 = vpop.trf.xlu0  ;;  %v1090_v6 = vmov 2147483648  }
  0xd3   : > { %vm282_vm0 = vcmp.lt.s32.totalorder %v199_v9, %v277_v10  ;;  %vm280_vm1 = vcmp.gt.s32.totalorder %v167_v11, %v276_v8  ;;  %vm281_vm2 = vcmp.eq.s32.totalorder %v167_v11, %v276_v8 }
  0xd4   : > { %vm283_vm3 = vmand %vm281_vm2, %vm282_vm0 }
  0xd5   : > { %vm284_vm4 = vmor %vm280_vm1, %vm283_vm3 }
  0xd6   : > { %v285_v12 = vsel %vm284_vm4, %v167_v11, %v276_v8  ;;  %v200_v13 = vpop.trf.xlu1  ;;  %v286_v14 = vsel %vm284_vm4, %v199_v9, %v277_v10  ;;  %v168_v15 = vpop.trf.xlu0  ;;  %v1091_v8 = vmov 2147483647  }
  0xd7   : > { %vm291_vm5 = vcmp.lt.s32.totalorder %v200_v13, %v286_v14  ;;  %vm289_vm6 = vcmp.gt.s32.totalorder %v168_v15, %v285_v12  ;;  %vm290_vm7 = vcmp.eq.s32.totalorder %v168_v15, %v285_v12 }
  0xd8   : > { %vm292_vm8 = vmand %vm290_vm7, %vm291_vm5 }
  0xd9   : > { %vm293_vm9 = vmor %vm289_vm6, %vm292_vm8 }
  0xda   : > { %v294_v16 = vsel %vm293_vm9, %v168_v15, %v285_v12  ;;  %v201_v17 = vpop.trf.xlu1  ;;  %v295_v18 = vsel %vm293_vm9, %v200_v13, %v286_v14  ;;  %v169_v19 = vpop.trf.xlu0  ;;  %v517_v13 = vld [vmem:[#allocation12] sm:$0xff] (%p89_p2)  ;;  %v518_v14 = vld [vmem:[#allocation14] sm:$0xff] (%p89_p2)  ;;  %v1092_v15 = vmov (%p89_p2), 839939668  }
  0xdb   : > { %vm300_vm10 = vcmp.lt.s32.totalorder %v201_v17, %v295_v18  ;;  %vm298_vm11 = vcmp.gt.s32.totalorder %v169_v19, %v294_v16  ;;  %vm299_vm12 = vcmp.eq.s32.totalorder %v169_v19, %v294_v16 }
  0xdc   : > { %vm301_vm13 = vmand %vm299_vm12, %vm300_vm10 }
  0xdd   : > { %vm302_vm14 = vmor %vm298_vm11, %vm301_vm13 }
  0xde   : > { %v303_v20 = vsel %vm302_vm14, %v169_v19, %v294_v16  ;;  %v202_v21 = vpop.trf.xlu1  ;;  %v304_v22 = vsel %vm302_vm14, %v201_v17, %v295_v18  ;;  %v170_v23 = vpop.trf.xlu0  ;;  %v542_v16 = vunpack.c.l.s4 (%p89_p2), %v1092_v15  ;;  %v1093_v17 = vmov (%p89_p2), 1417023538  }
  0xdf   : > { %vm309_vm15 = vcmp.lt.s32.totalorder %v202_v21, %v304_v22  ;;  %vm307_vm0 = vcmp.gt.s32.totalorder %v170_v23, %v303_v20  ;;  %vm308_vm1 = vcmp.eq.s32.totalorder %v170_v23, %v303_v20  ;;  %v570_v18 = vunpack.c.l.s4 (%p89_p2), %v1093_v17 }
  0xe0   : > { %vm310_vm2 = vmand %vm308_vm1, %vm309_vm15  ;;  %v543_v19 = vunpack.c.0.s8 (%p89_p2), %v542_v16 }
  0xe1   : > { %vm311_vm3 = vmor %vm307_vm0, %vm310_vm2 }
  0xe2   : > { %v312_v24 = vsel %vm311_vm3, %v170_v23, %v303_v20  ;;  %v203_v25 = vpop.trf.xlu1  ;;  %v313_v26 = vsel %vm311_vm3, %v202_v21, %v304_v22  ;;  %v171_v27 = vpop.trf.xlu0  ;;  %v563_v23 = vand.u32 (%p89_p2), 4, %v1118_v7 }
  0xe3   : > { %vm318_vm4 = vcmp.lt.s32.totalorder %v203_v25, %v313_v26  ;;  %vm316_vm5 = vcmp.gt.s32.totalorder %v171_v27, %v312_v24  ;;  %vm317_vm6 = vcmp.eq.s32.totalorder %v171_v27, %v312_v24 }
  0xe4   : > { %vm319_vm7 = vmand %vm317_vm6, %vm318_vm4 }
  0xe5   : > { %vm320_vm8 = vmor %vm316_vm5, %vm319_vm7 }
  0xe6   : > { %v321_v28 = vsel %vm320_vm8, %v171_v27, %v312_v24  ;;  %v204_v29 = vpop.trf.xlu1  ;;  %v322_v30 = vsel %vm320_vm8, %v203_v25, %v313_v26  ;;  %v172_v31 = vpop.trf.xlu0  ;;  %v571_v25 = vunpack.c.0.s8 (%p89_p2), %v570_v18 }
  0xe7   : > { %vm327_vm9 = vcmp.lt.s32.totalorder %v204_v29, %v322_v30  ;;  %vm325_vm10 = vcmp.gt.s32.totalorder %v172_v31, %v321_v28  ;;  %vm326_vm11 = vcmp.eq.s32.totalorder %v172_v31, %v321_v28 }
  0xe8   : > { %vm328_vm12 = vmand %vm326_vm11, %vm327_vm9 }
  0xe9   : > { %vm329_vm13 = vmor %vm325_vm10, %vm328_vm12 }
  0xea   : > { %v330_v32 = vsel %vm329_vm13, %v172_v31, %v321_v28  ;;  %v205_v33 = vpop.trf.xlu1  ;;  %v331_v34 = vsel %vm329_vm13, %v204_v29, %v322_v30  ;;  %v173_v35 = vpop.trf.xlu0  ;;  %v1094_v31 = vmov (%p89_p2), 1732584193  }
  0xeb   : > { %vm336_vm14 = vcmp.lt.s32.totalorder %v205_v33, %v331_v34  ;;  %vm334_vm15 = vcmp.gt.s32.totalorder %v173_v35, %v330_v32  ;;  %vm335_vm0 = vcmp.eq.s32.totalorder %v173_v35, %v330_v32 }
  0xec   : > { %vm337_vm1 = vmand %vm335_vm0, %vm336_vm14 }
  0xed   : > { %vm338_vm2 = vmor %vm334_vm15, %vm337_vm1 }
  0xee   : > { %v339_v36 = vsel %vm338_vm2, %v173_v35, %v330_v32  ;;  %v340_v37 = vsel %vm338_vm2, %v205_v33, %v331_v34  ;;  %v598_v32 = vunpack.c.l.s4 (%p89_p2), %v1094_v31  ;;  %v1147_v33 = vsub.s32 (%p89_p2), %v571_v25, %v1118_v7 }
  0xef   : > { %v342_v38 = vrot.slane %v339_v36, 1  ;;  %v343_v39 = vrot.slane %v340_v37, 1  ;;  %v591_v34 = vand.u32 (%p89_p2), 2, %v1118_v7 }
  0xf1   : > { %vm345_vm3 = vcmp.gt.s32.totalorder %v342_v38, %v339_v36  ;;  %vm346_vm4 = vcmp.eq.s32.totalorder %v342_v38, %v339_v36  ;;  %vm347_vm5 = vcmp.lt.s32.totalorder %v343_v39, %v340_v37 }
  0xf2   : > { %vm348_vm6 = vmand %vm346_vm4, %vm347_vm5 }
  0xf3   : > { %vm349_vm7 = vmor %vm345_vm3, %vm348_vm6 }
  0xf4   : > { %v350_v40 = vsel %vm349_vm7, %v342_v38, %v339_v36  ;;  %v351_v41 = vsel %vm349_vm7, %v343_v39, %v340_v37  ;;  %v599_v37 = vunpack.c.0.s8 (%p89_p2), %v598_v32 }
  0xf5   : > { %v353_v42 = vrot.slane %v350_v40, 1  ;;  %v354_v43 = vrot.slane %v351_v41, 1 }
  0xf7   : > { %vm356_vm8 = vcmp.gt.s32.totalorder %v353_v42, %v350_v40  ;;  %vm357_vm9 = vcmp.eq.s32.totalorder %v353_v42, %v350_v40  ;;  %vm358_vm10 = vcmp.lt.s32.totalorder %v354_v43, %v351_v41 }
  0xf8   : > { %vm359_vm11 = vmand %vm357_vm9, %vm358_vm10 }
  0xf9   : > { %vm360_vm12 = vmor %vm356_vm8, %vm359_vm11 }
  0xfa   : > { %v361_v44 = vsel %vm360_vm12, %v353_v42, %v350_v40  ;;  %v362_v45 = vsel %vm360_vm12, %v354_v43, %v351_v41  ;;  %v1161_v42 = vsub.s32 (%p89_p2), %v599_v37, %v1118_v7 }
  0xfb   : > { %v364_v46 = vrot.slane %v361_v44, 1  ;;  %v365_v47 = vrot.slane %v362_v45, 1 }
  0xfd   : > { %vm369_vm13 = vcmp.lt.s32.totalorder %v365_v47, %v362_v45  ;;  %vm367_vm14 = vcmp.gt.s32.totalorder %v364_v46, %v361_v44  ;;  %vm368_vm15 = vcmp.eq.s32.totalorder %v364_v46, %v361_v44 }
  0xfe   : > { %vm370_vm0 = vmand %vm368_vm15, %vm369_vm13 }
  0xff   : > { %vm371_vm1 = vmor %vm367_vm14, %vm370_vm0 }
 0x100   : > { %v372_v48 = vsel %vm371_vm1, %v364_v46, %v361_v44  ;;  %v373_v49 = vsel %vm371_vm1, %v365_v47, %v362_v45  ;;  %v619_v46 = vand.u32 (%p89_p2), 1, %v1118_v7 }
 0x101   : > { %v375_v50 = vrot.slane %v372_v48, 1  ;;  %v376_v51 = vrot.slane %v373_v49, 1 }
 0x103   : > { %vm378_vm2 = vcmp.gt.s32.totalorder %v375_v50, %v372_v48  ;;  %vm379_vm3 = vcmp.eq.s32.totalorder %v375_v50, %v372_v48  ;;  %vm380_vm4 = vcmp.lt.s32.totalorder %v376_v51, %v373_v49 }
 0x104   : > { %vm381_vm5 = vmand %vm379_vm3, %vm380_vm4 }
 0x105   : > { %vm382_vm6 = vmor %vm378_vm2, %vm381_vm5 }
 0x106   : > { %v383_v52 = vsel %vm382_vm6, %v375_v50, %v372_v48  ;;  %v384_v53 = vsel %vm382_vm6, %v376_v51, %v373_v49 }
 0x107   : > { %v386_v54 = vrot.slane %v383_v52, 1  ;;  %v387_v55 = vrot.slane %v384_v53, 1 }
 0x109   : > { %vm389_vm7 = vcmp.gt.s32.totalorder %v386_v54, %v383_v52  ;;  %vm390_vm8 = vcmp.eq.s32.totalorder %v386_v54, %v383_v52  ;;  %vm391_vm9 = vcmp.lt.s32.totalorder %v387_v55, %v384_v53 }
 0x10a   : > { %vm392_vm10 = vmand %vm390_vm8, %vm391_vm9 }
 0x10b   : > { %vm393_vm11 = vmor %vm389_vm7, %vm392_vm10 }
 0x10c   : > { %v394_v56 = vsel %vm393_vm11, %v386_v54, %v383_v52  ;;  %v395_v57 = vsel %vm393_vm11, %v387_v55, %v384_v53 }
 0x10d   : > { %v397_v58 = vrot.slane %v394_v56, 1  ;;  %v398_v59 = vrot.slane %v395_v57, 1 }
 0x10f   : > { %vm400_vm12 = vcmp.gt.s32.totalorder %v397_v58, %v394_v56  ;;  %vm401_vm13 = vcmp.eq.s32.totalorder %v397_v58, %v394_v56  ;;  %vm402_vm14 = vcmp.lt.s32.totalorder %v398_v59, %v395_v57 }
 0x110   : > { %vm403_vm15 = vmand %vm401_vm13, %vm402_vm14  ;;  %vm1141_vm13 = vcmp.ne.s32.totalorder (%p89_p2), %v563_v23, 0 }
 0x111   : > { %vm404_vm0 = vmor %vm400_vm12, %vm403_vm15 }
 0x112   : > { %v405_v60 = vsel %vm404_vm0, %v397_v58, %v394_v56  ;;  %v406_v61 = vsel %vm404_vm0, %v398_v59, %v395_v57 }
 0x113   : > { %v408_v62 = vrot.slane %v405_v60, 1  ;;  %v409_v63 = vrot.slane %v406_v61, 1 }
 0x115   : > { %vm411_vm1 = vcmp.gt.s32.totalorder %v408_v62, %v405_v60  ;;  %vm412_vm2 = vcmp.eq.s32.totalorder %v408_v62, %v405_v60  ;;  %vm413_vm3 = vcmp.lt.s32.totalorder %v409_v63, %v406_v61 }
 0x116   : > { %vm414_vm4 = vmand %vm412_vm2, %vm413_vm3 }
 0x117   : > { %vm415_vm5 = vmor %vm411_vm1, %vm414_vm4 }
 0x118   : > { %v417_v0 = vsel %vm415_vm5, %v409_v63, %v406_v61  ;;  %v416_v1 = vsel %vm415_vm5, %v408_v62, %v405_v60 }
 0x119   : > { %424 = vxpose.xlu0.b32.start.end [1/1] (short) (narrow) %v417_v0, 8  ;;  %420 = vst [vmem:[%s419_s13] sm:$0x1] %v416_v1  ;;  %422 = vst [vmem:[%s421_s14] sm:$0x1] %v417_v0  ;;  %s958_s13 = sshll.u32 (%p89_p2), %s1095_s0, 4  ;;  %s959_s13 = int_to_ptr.vmem [resolvable:$true] %s958_s13 }
 0x11a   :  { %s1054_s14 = scalar_lea.vmem (%p89_p2), %s959_s13, 32  ;;  %p1059_p4 = scmp.lt.s32.totalorder (%p89_p2), %s959_s13, %s959_s13 }
 0x11b   :  { %p1055_p3 = scmp.ne.s32.totalorder (%p89_p2), %s959_s13, %s1054_s14  ;;  %p1060_p5 = scmp.lt.s32.totalorder (%p89_p2), %s1054_s14, %s1054_s14 }
 0x11d   :  { %p1061_p6 = por (%p89_p2), %p1060_p5, %p1059_p4 }
 0x11f   :  { %p1062_p7 = pnand (%p89_p2), %p1061_p6, %p1055_p3 }
 0x120   :  { %v505_v11 = vld [vmem:[#allocation13 + $0x7] ss:$-1 sm:$0xff] (%p89_p2)  ;;  %v511_v12 = vld [vmem:[#allocation15 + $0x7] ss:$-1 sm:$0xff] (%p89_p2) }
 0x121   :  { %vm523_vm8 = vcmp.gt.s32.totalorder (%p89_p2), %v517_v13, %v505_v11  ;;  %vm524_vm9 = vcmp.eq.s32.totalorder (%p89_p2), %v517_v13, %v505_v11  ;;  %vm525_vm10 = vcmp.lt.s32.totalorder (%p89_p2), %v518_v14, %v511_v12 }
 0x122   :  { %vm526_vm11 = vmand (%p89_p2), %vm524_vm9, %vm525_vm10  ;;  %vm1154_vm9 = vcmp.ne.s32.totalorder (%p89_p2), %v591_v34, 0 }
 0x123   :  { %vm527_vm12 = vmor (%p89_p2), %vm523_vm8, %vm526_vm11 }
 0x124   :  { %v528_v20 = vsel (%p89_p2), %vm527_vm12, %v517_v13, %v505_v11  ;;  %v530_v21 = vsel (%p89_p2), %vm527_vm12, %v505_v11, %v517_v13  ;;  %v532_v22 = vsel (%p89_p2), %vm527_vm12, %v518_v14, %v511_v12  ;;  %v534_v24 = vsel (%p89_p2), %vm527_vm12, %v511_v12, %v518_v14 }
 0x199   : > { %v440_v2 = vpop.trf.xlu0 }
 0x19a   : > { %v479_v4 = vrot.slane %v440_v2, 1  ;;  %1031 = vpush %v440_v2 }
 0x19c   : > { %1033 = vpush %v479_v4 }
 0x1cb   : > { %s1032_s15 = spop %1031 }
 0x1cc   : > { %s457_s16 = sshrl.u32 %s1032_s15, 9  ;;  %s459_s17 = ssub.s32 0, %s1032_s15 }
 0x1cd   : > { %p458_p0 = scmp.lt.s32.totalorder %s1032_s15, 0  ;;  %s1023_s18 = smin.u32 %s1032_s15, %s459_s17 }
 0x1ce   : > { %s461_s19 = sand.u32 511, %s1023_s18   ;;  %s1025_s20 = sshll.u32 %s457_s16, 3 }
 0x1cf   : > { %s462_s21 = ssub.s32 0, %s461_s19  ;;  %s1034_s22 = spop %1033 }
 0x1d0   : > { %s1231_s21 = smov (!%p458_p0, %s462_s21), %s461_s19  ;;  %s483_s26 = ssub.s32 0, %s1034_s22 }
 0x1d1   : > { %s464_s23 = sshrl.u32 %s1231_s21, 7  ;;  %s466_s24 = sand.u32 127, %s1231_s21  }
 0x1d2   : > { %s1024_s25 = sshll.u32 %s464_s23, 8  ;;  %s1027_s28 = smin.u32 %s1034_s22, %s483_s26 }
 0x1d3   : > { %s467_s27 = sadd.s32 %s1024_s25, %s466_s24  ;;  %p482_p1 = scmp.lt.s32.totalorder %s1034_s22, 0 }
 0x1d4   : > { %v469_v5 = vstv %s467_s27  ;;  %s485_s29 = sand.u32 511, %s1027_s28   ;;  %s473_s3 = scalar_lea.vmem [#allocation16], %s1025_s20 }
 0x1d5   : > { %vm471_vm6 = vcmp.eq.s32.totalorder %v43_v3, %v469_v5  ;;  %s486_s30 = ssub.s32 0, %s485_s29  ;;  %s476_s4 = scalar_lea.vmem [#allocation17], %s1025_s20 }
 0x1d6   : > { %474 = vst.msk [vmem:[%s473_s3] sm:$0xff] %vm471_vm6, %v1090_v6  ;;  %477 = vst.msk [vmem:[%s476_s4] sm:$0xff] %vm471_vm6, %v1091_v8  ;;  %s1233_s30 = smov (!%p482_p1, %s486_s30), %s485_s29  ;;  %s481_s5 = sshrl.u32 %s1034_s22, 9 }
 0x1d7   : > { %s488_s6 = sshrl.u32 %s1233_s30, 7  ;;  %s490_s7 = sand.u32 127, %s1233_s30  }
 0x1d8   : > { %s1028_s8 = sshll.u32 %s488_s6, 8  ;;  %s1029_s10 = sshll.u32 %s481_s5, 3 }
 0x1d9   : > { %s491_s9 = sadd.s32 %s1028_s8, %s490_s7  ;;  %s497_s11 = scalar_lea.vmem [#allocation16], %s1029_s10 }
 0x1da   : > { %v493_v9 = vstv %s491_s9  ;;  %s500_s12 = scalar_lea.vmem [#allocation17], %s1029_s10  ;;  %91 = sbr.rel (!%p89_p2) target bundleno = 17 (0x11), region = 107 }
 0x1db   : > { %v494_v10 = vadd.s32 128, %v493_v9 }
 0x1dd   : > { %vm495_vm7 = vcmp.eq.s32.totalorder %v43_v3, %v494_v10  ;;  %v1136_v3 = vsub.s32 (%p89_p2), %v543_v19, %v1118_v7 }
 0x1de   : > { %498 = vst.msk [vmem:[%s497_s11] sm:$0xff] %vm495_vm7, %v1090_v6  ;;  %501 = vst.msk [vmem:[%s500_s12] sm:$0xff] %vm495_vm7, %v1091_v8 }
 0x1df   :  { %v547_v26 = vrot.slane (%p89_p2), %v528_v20, %v1136_v3  ;;  %v554_v27 = vrot.slane (%p89_p2), %v532_v22, %v1136_v3  ;;  %v728_v28 = vrot.slane (%p89_p2), %v530_v21, %v1136_v3  ;;  %v735_v30 = vrot.slane (%p89_p2), %v534_v24, %v1136_v3 }
 0x1e1   :  { %vm556_vm14 = vcmp.gt.s32.totalorder %v528_v20, %v547_v26  ;;  %vm557_vm15 = vcmp.eq.s32.totalorder %v528_v20, %v547_v26  ;;  %vm558_vm0 = vcmp.lt.s32.totalorder %v532_v22, %v554_v27  ;;  %vm738_vm2 = vcmp.eq.s32.totalorder %v530_v21, %v728_v28 }
 0x1e2   :  { %vm559_vm1 = vmand %vm557_vm15, %vm558_vm0  ;;  %vm739_vm3 = vcmp.lt.s32.totalorder %v534_v24, %v735_v30  ;;  %vm737_vm5 = vcmp.gt.s32.totalorder %v530_v21, %v728_v28 }
 0x1e3   :  { %vm560_vm4 = vmor %vm556_vm14, %vm559_vm1 }
 0x1e4   :  { %vm565_vm6 = vmxor %vm560_vm4, %vm1141_vm13 }
 0x1e5   :  { %v566_v35 = vsel %vm565_vm6, %v528_v20, %v547_v26  ;;  %v567_v36 = vsel %vm565_vm6, %v532_v22, %v554_v27  ;;  %vm740_vm7 = vmand %vm738_vm2, %vm739_vm3 }
 0x1e6   :  { %v575_v38 = vrot.slane %v566_v35, %v1147_v33  ;;  %v582_v39 = vrot.slane %v567_v36, %v1147_v33  ;;  %vm741_vm8 = vmor %vm737_vm5, %vm740_vm7 }
 0x1e7   :  { %vm746_vm10 = vmxor %vm741_vm8, %vm1141_vm13 }
 0x1e8   :  { %vm584_vm11 = vcmp.gt.s32.totalorder %v566_v35, %v575_v38  ;;  %vm585_vm12 = vcmp.eq.s32.totalorder %v566_v35, %v575_v38  ;;  %vm586_vm14 = vcmp.lt.s32.totalorder %v567_v36, %v582_v39  ;;  %v747_v41 = vsel %vm746_vm10, %v530_v21, %v728_v28 }
 0x1e9   :  { %vm587_vm15 = vmand %vm585_vm12, %vm586_vm14  ;;  %v748_v43 = vsel %vm746_vm10, %v534_v24, %v735_v30  ;;  %v756_v44 = vrot.slane %v747_v41, %v1147_v33 }
 0x1ea   :  { %vm588_vm0 = vmor %vm584_vm11, %vm587_vm15  ;;  %v763_v45 = vrot.slane %v748_v43, %v1147_v33  ;;  %vm1170_vm11 = vcmp.ne.s32.totalorder %v619_v46, 0 }
 0x1eb   :  { %vm593_vm1 = vmxor %vm588_vm0, %vm1154_vm9  ;;  %vm765_vm2 = vcmp.gt.s32.totalorder %v747_v41, %v756_v44  ;;  %vm766_vm3 = vcmp.eq.s32.totalorder %v747_v41, %v756_v44 }
 0x1ec   :  { %v594_v47 = vsel %vm593_vm1, %v566_v35, %v575_v38  ;;  %v595_v48 = vsel %vm593_vm1, %v567_v36, %v582_v39  ;;  %vm767_vm4 = vcmp.lt.s32.totalorder %v748_v43, %v763_v45 }
 0x1ed   :  { %v603_v49 = vrot.slane %v594_v47, %v1161_v42  ;;  %v610_v50 = vrot.slane %v595_v48, %v1161_v42  ;;  %vm768_vm5 = vmand %vm766_vm3, %vm767_vm4 }
 0x1ee   :  { %vm769_vm6 = vmor %vm765_vm2, %vm768_vm5 }
 0x1ef   :  { %vm612_vm7 = vcmp.gt.s32.totalorder %v594_v47, %v603_v49  ;;  %vm613_vm8 = vcmp.eq.s32.totalorder %v594_v47, %v603_v49  ;;  %vm614_vm10 = vcmp.lt.s32.totalorder %v595_v48, %v610_v50  ;;  %vm774_vm12 = vmxor %vm769_vm6, %vm1154_vm9 }
 0x1f0   :  { %vm615_vm14 = vmand %vm613_vm8, %vm614_vm10  ;;  %v775_v7 = vsel %vm774_vm12, %v747_v41, %v756_v44  ;;  %v776_v52 = vsel %vm774_vm12, %v748_v43, %v763_v45 }
 0x1f1   :  { %vm616_vm15 = vmor %vm612_vm7, %vm615_vm14  ;;  %v784_v53 = vrot.slane %v775_v7, %v1161_v42  ;;  %v791_v54 = vrot.slane %v776_v52, %v1161_v42 }
 0x1f2   :  { %vm621_vm0 = vmxor %vm616_vm15, %vm1170_vm11 }
 0x1f3   :  { %v622_v55 = vsel %vm621_vm0, %v594_v47, %v603_v49  ;;  %v623_v56 = vsel %vm621_vm0, %v595_v48, %v610_v50  ;;  %vm793_vm1 = vcmp.gt.s32.totalorder %v775_v7, %v784_v53  ;;  %vm794_vm2 = vcmp.eq.s32.totalorder %v775_v7, %v784_v53 }
 0x1f4   :  { %v637_v57 = vrot.slane %v622_v55, %v1136_v3  ;;  %v644_v58 = vrot.slane %v623_v56, %v1136_v3  ;;  %vm795_vm3 = vcmp.lt.s32.totalorder %v776_v52, %v791_v54 }
 0x1f5   :  { %vm796_vm4 = vmand %vm794_vm2, %vm795_vm3 }
 0x1f6   :  { %vm646_vm5 = vcmp.gt.s32.totalorder %v622_v55, %v637_v57  ;;  %vm647_vm6 = vcmp.eq.s32.totalorder %v622_v55, %v637_v57  ;;  %vm648_vm7 = vcmp.lt.s32.totalorder %v623_v56, %v644_v58  ;;  %vm797_vm8 = vmor %vm793_vm1, %vm796_vm4 }
 0x1f7   :  { %vm649_vm10 = vmand %vm647_vm6, %vm648_vm7 }
 0x1f8   :  { %vm650_vm12 = vmor %vm646_vm5, %vm649_vm10 }
 0x1f9   :  { %vm655_vm14 = vmxor %vm650_vm12, %vm1141_vm13 }
 0x1fa   :  { %v656_v59 = vsel %vm655_vm14, %v622_v55, %v637_v57  ;;  %v657_v60 = vsel %vm655_vm14, %v623_v56, %v644_v58  ;;  %vm802_vm15 = vmxor %vm797_vm8, %vm1170_vm11 }
 0x1fb   :  { %v665_v61 = vrot.slane %v656_v59, %v1147_v33  ;;  %v672_v62 = vrot.slane %v657_v60, %v1147_v33  ;;  %v803_v63 = vsel %vm802_vm15, %v775_v7, %v784_v53  ;;  %v804_v0 = vsel %vm802_vm15, %v776_v52, %v791_v54 }
 0x1fc   :  { %v818_v1 = vrot.slane %v803_v63, %v1136_v3  ;;  %v825_v2 = vrot.slane %v804_v0, %v1136_v3 }
 0x1fd   :  { %vm674_vm0 = vcmp.gt.s32.totalorder %v656_v59, %v665_v61  ;;  %vm675_vm1 = vcmp.eq.s32.totalorder %v656_v59, %v665_v61  ;;  %vm676_vm2 = vcmp.lt.s32.totalorder %v657_v60, %v672_v62 }
 0x1fe   :  { %vm677_vm3 = vmand %vm675_vm1, %vm676_vm2  ;;  %vm828_vm4 = vcmp.eq.s32.totalorder %v803_v63, %v818_v1  ;;  %vm829_vm5 = vcmp.lt.s32.totalorder %v804_v0, %v825_v2  ;;  %vm827_vm7 = vcmp.gt.s32.totalorder %v803_v63, %v818_v1 }
 0x1ff   :  { %vm678_vm6 = vmor %vm674_vm0, %vm677_vm3 }
 0x200   :  { %vm683_vm8 = vmxor %vm678_vm6, %vm1154_vm9 }
 0x201   :  { %v684_v4 = vsel %vm683_vm8, %v656_v59, %v665_v61  ;;  %v685_v5 = vsel %vm683_vm8, %v657_v60, %v672_v62  ;;  %vm830_vm10 = vmand %vm828_vm4, %vm829_vm5 }
 0x202   :  { %v693_v6 = vrot.slane %v684_v4, %v1161_v42  ;;  %v700_v8 = vrot.slane %v685_v5, %v1161_v42  ;;  %vm831_vm12 = vmor %vm827_vm7, %vm830_vm10 }
 0x203   :  { %vm836_vm14 = vmxor %vm831_vm12, %vm1141_vm13 }
 0x204   :  { %vm702_vm15 = vcmp.gt.s32.totalorder %v684_v4, %v693_v6  ;;  %vm703_vm1 = vcmp.eq.s32.totalorder %v684_v4, %v693_v6  ;;  %vm704_vm2 = vcmp.lt.s32.totalorder %v685_v5, %v700_v8  ;;  %v837_v9 = vsel %vm836_vm14, %v803_v63, %v818_v1 }
 0x205   :  { %vm705_vm0 = vmand %vm703_vm1, %vm704_vm2  ;;  %v838_v10 = vsel %vm836_vm14, %v804_v0, %v825_v2  ;;  %v846_v11 = vrot.slane %v837_v9, %v1147_v33 }
 0x206   :  { %vm706_vm3 = vmor %vm702_vm15, %vm705_vm0  ;;  %v853_v12 = vrot.slane %v838_v10, %v1147_v33 }
 0x207   :  { %vm711_vm4 = vmxor %vm706_vm3, %vm1170_vm11  ;;  %vm855_vm5 = vcmp.gt.s32.totalorder %v837_v9, %v846_v11  ;;  %vm856_vm6 = vcmp.eq.s32.totalorder %v837_v9, %v846_v11 }
 0x208   :  { %v712_v13 = vsel %vm711_vm4, %v684_v4, %v693_v6  ;;  %v713_v14 = vsel %vm711_vm4, %v685_v5, %v700_v8  ;;  %vm857_vm7 = vcmp.lt.s32.totalorder %v838_v10, %v853_v12 }
 0x209   :  { %715 = vst [vmem:[#allocation12] sm:$0xff] %v712_v13  ;;  %716 = vst [vmem:[#allocation14] sm:$0xff] %v713_v14 }
 0x20a   :  { %vm858_vm13 = vmand %vm856_vm6, %vm857_vm7 }
 0x20b   :  { %vm859_vm8 = vmor %vm855_vm5, %vm858_vm13 }
 0x20c   :  { %vm864_vm10 = vmxor %vm859_vm8, %vm1154_vm9 }
 0x20d   :  { %v865_v15 = vsel %vm864_vm10, %v837_v9, %v846_v11  ;;  %v866_v16 = vsel %vm864_vm10, %v838_v10, %v853_v12 }
 0x20e   :  { %v874_v17 = vrot.slane %v865_v15, %v1161_v42  ;;  %v881_v18 = vrot.slane %v866_v16, %v1161_v42 }
 0x210   :  { %vm883_vm12 = vcmp.gt.s32.totalorder %v865_v15, %v874_v17  ;;  %vm884_vm14 = vcmp.eq.s32.totalorder %v865_v15, %v874_v17  ;;  %vm885_vm15 = vcmp.lt.s32.totalorder %v866_v16, %v881_v18  ;;  %v923_v21 = vld [vmem:[#allocation14] sm:$0xff]  ;;  %v899_v22 = vld [vmem:[#allocation12] sm:$0xff] }
 0x211   :  { %vm886_vm1 = vmand %vm884_vm14, %vm885_vm15  ;;  %924 = vxpose.xlu0.b32.start.end [1/1] (short) (narrow) %v923_v21, 8  ;;  %vm900_vm9 = vcmp.lt.s32.totalorder %v899_v22, 0  ;;  %v901_v23 = vsub.s32 2147483647, %v899_v22 }
 0x212   :  { %vm887_vm2 = vmor %vm883_vm12, %vm886_vm1 }
 0x213   :  { %vm892_vm0 = vmxor %vm887_vm2, %vm1170_vm11  ;;  %v902_v24 = vsel %vm900_vm9, %v901_v23, %v899_v22 }
 0x214   :  { %v893_v19 = vsel %vm892_vm0, %v865_v15, %v874_v17  ;;  %v894_v20 = vsel %vm892_vm0, %v866_v16, %v881_v18  ;;  %903 = vst [vmem:[#allocation12] sm:$0xff] %v902_v24 }
 0x215   :  { %896 = vst [vmem:[#allocation13] sm:$0xff] %v893_v19  ;;  %897 = vst [vmem:[#allocation15] sm:$0xff] %v894_v20  ;;  %905 = vxpose.xlu0.b32.start.end [1/1] (short) (narrow) %v902_v24, 8 }
 0x291   :  { %v925_v3 = vpop.trf.xlu0 }
 0x292   :  { %941 = vst [vmem:[#allocation10] sm:$0xff] %v925_v3 }
 0x295   :  { %v906_v25 = vpop.trf.xlu0 }
 0x296   :  { %922 = vst [vmem:[#allocation7] sm:$0xff] %v906_v25 }
 0x299   :  { %v951_v26 = vld [vmem:[#allocation10] sm:$0x3] }
 0x29a   :  { %953 = vst [vmem:[#allocation11] sm:$0x3] %v951_v26 }
 0x29d   :  { %v945_v27 = vld [vmem:[#allocation7] sm:$0x3] }
 0x29e   :  { %947 = vst [vmem:[#allocation8] sm:$0x3] %v945_v27 }
 0x29f   :  { %1065 = shalt.err (!%p1062_p7)
}
 0x2a0   :  { %s1066_s17 = scalar_lea.hbm %s1222_s1, 32 }
 0x2a1   :  { %p1067_p8 = scmp.ne.s32.totalorder %s1222_s1, %s1066_s17  ;;  %p1070_p9 = scmp.lt.u32.totalorder %s1066_s17, %s1222_s1 }
 0x2a3   :  { %p1072_p10 = pnand %p1070_p9, %p1067_p8 }
 0x2a5   :  { %1075 = shalt.err (!%p1072_p10)
}
 0x2a6   :  { %961 = dma.vmem_to_hbm [thread:$0]  %s959_s13, 32, %s1222_s1, [#allocation9]   ;;  %v977_v28 = vld [vmem:[#allocation11] sm:$0x3] }
 0x2a7   :  { %978 = vst [vmem:[%s1223_s2] sm:$0x3] %v977_v28 }
 0x2a8   :  { %1080 = dma.done.wait [#allocation9], 32  }
 0x2a9   :  { %1081 = vsyncadd [#allocation9], 4294967264 }
 0x2aa   :  { %994 = vsyncpa [#allocation9], 1 }

// kernel: a_call__.2
= control target key start
LH: loop header
LB: loop body
LE: loop exit
PB: predicated region body
PF: predicated region fallthrough
CT: control target
= control target key end

     0   :  { %s2353_s13 = smov 0   ;;  %s2730_s0 = inlined_call_operand.vmem [shape: f32[512,3], index: 0, kind: input, shape index: {}]   ;;  %s2731_s1 = inlined_call_operand.vmem [shape: bf16[3,128], index: 1, kind: input, shape index: {}]   ;;  %s2732_s2 = inlined_call_operand.vmem [shape: f32[1,128], index: 2, kind: input, shape index: {}]   ;;  %s2733_s3 = inlined_call_operand.vmem [shape: bf16[128,128], index: 3, kind: input, shape index: {}]   ;;  %s2734_s4 = inlined_call_operand.vmem [shape: f32[1,128], index: 4, kind: input, shape index: {}]   ;;  %s2735_s5 = inlined_call_operand.vmem [shape: bf16[128,128], index: 5, kind: input, shape index: {}]   ;;  %s2736_s6 = inlined_call_operand.vmem [shape: f32[1,128], index: 6, kind: input, shape index: {}]   ;;  %s2737_s7 = inlined_call_operand.vmem [shape: bf16[128,128], index: 7, kind: input, shape index: {}]   ;;  %s2738_s8 = inlined_call_operand.vmem [shape: f32[1,128], index: 8, kind: input, shape index: {}]   ;;  %s2739_s9 = inlined_call_operand.vmem [shape: bf16[512,128], index: 9, kind: output, shape index: {0}]   ;;  %s2740_s10 = inlined_call_operand.vmem [shape: f32[512,128], index: 10, kind: output, shape index: {1}]  }
   0x1 LB: > { %s1757_s14 = sadd.s32 4294967295, %s2295_s13   ;;  %p1761_p0 = scmp.ge.s32.totalorder %s2295_s13, 1  ;;  %s2295_s13 = sphi %s2353_s13, %s21_s13  }
   0x2   : > { %p316_p1 = scmp.lt.s32.totalorder %s2295_s13, 3 }
   0x4   : > { %p317_p2 = pnand %p1761_p0, %p316_p1 }
   0x5   : > { %v426_v0 = vld [vmem:[%s2731_s1] sm:$0x3] (!%p317_p2)  ;;  %vm483_vm0 = vcmask (!%p317_p2), 1040384   ;;  %vm484_vm1 = vcmask (!%p317_p2), 1041408   ;;  %s1762_s17 = sshll.u32 (!%p317_p2), %s1757_s14, 5  ;;  %v2297_v1 = vmov (!%p317_p2), 65535  }
   0x6   : > { %320 = sbr.rel (%p317_p2) target bundleno = 960 (0x3c0), region = 56  ;;  %v485_v2 = vsel (!%p317_p2), %vm483_vm0, 4294967295, %v2297_v1  ;;  %p360_p3 = scmp.lt.s32.totalorder (!%p317_p2), %s1762_s17, 63  ;;  %v2265_v3 = vld [vmem:[%s2733_s3] sm:$0xff] (!%p317_p2)   ;;  %v2266_v5 = vld [vmem:[%s2733_s3 + $0x8] sm:$0xff] (!%p317_p2)   ;;  %v2267_v7 = vld [vmem:[%s2733_s3 + $0x10] sm:$0xff] (!%p317_p2)  }
   0x7   : > { %v486_v4 = vsel (!%p317_p2), %vm484_vm1, %v485_v2, 0  ;;  %2096 = vmatprep.subr.bf16.mxu1 (!%p317_p2), %v2265_v3  ;;  %vm434_vm2 = vcmask (!%p317_p2), 23552   ;;  %v2268_v17 = vld [vmem:[%s2733_s3 + $0x18] sm:$0xff] (!%p317_p2)   ;;  %v2269_v22 = vld [vmem:[%s2733_s3 + $0x20] sm:$0xff] (!%p317_p2)   ;;  %v2270_v25 = vld [vmem:[%s2733_s3 + $0x28] sm:$0xff] (!%p317_p2)  }
   0x8   : > { %v488_v6 = vand.u32 (!%p317_p2), %v486_v4, %v426_v0  ;;  %2097 = vmatpush3.bf16.msra.mxu1 (!%p317_p2), %v2265_v3  ;;  %v2271_v59 = vld [vmem:[%s2733_s3 + $0x30] sm:$0xff] (!%p317_p2)   ;;  %v2272_v60 = vld [vmem:[%s2733_s3 + $0x38] sm:$0xff] (!%p317_p2)   ;;  %v2273_v61 = vld [vmem:[%s2735_s5] sm:$0xff] (!%p317_p2)  }
   0x9   : > { %2098 = vmatprep.subr.bf16.mxu1 (!%p317_p2), %v2266_v5  ;;  %v2274_v62 = vld [vmem:[%s2735_s5 + $0x8] sm:$0xff] (!%p317_p2)   ;;  %v2275_v63 = vld [vmem:[%s2735_s5 + $0x10] sm:$0xff] (!%p317_p2)   ;;  %v2276_v0 = vld [vmem:[%s2735_s5 + $0x18] sm:$0xff] (!%p317_p2)  }
   0xa   : > { %2062 = vmatprep.subr.bf16.mxu0 (!%p317_p2), %v488_v6  ;;  %v2277_v1 = vld [vmem:[%s2735_s5 + $0x20] sm:$0xff] (!%p317_p2)   ;;  %v2278_v2 = vld [vmem:[%s2735_s5 + $0x28] sm:$0xff] (!%p317_p2)   ;;  %v2279_v3 = vld [vmem:[%s2735_s5 + $0x30] sm:$0xff] (!%p317_p2)  }
   0xb   : > { %2063 = vmatpush3.bf16.msra.mxu0 (!%p317_p2), %v488_v6  ;;  %v2470_v4 = vld [vmem:[%s2732_s2] ss:$0 sm:$0xff] (!%p317_p2) }
   0xc   : > { %2099 = vmatpush3.bf16.msra.mxu1 (!%p317_p2), %v2266_v5  ;;  %2144 = vmatprep.subr.bf16.mxu0 (!%p317_p2), %v2273_v61 }
   0xd   : > { %s2742_s17 = smov (!%p360_p3, %s1762_s17), 63  ;;  %2100 = vmatprep.subr.bf16.mxu1 %v2267_v7 }
   0xe   : > { %s1763_s22 = sshll.u32 %s2742_s17, 3  ;;  %s1765_s18 = sshll.u32 %s2742_s17, 2 }
   0xf   : > { %s2381_s27 = scalar_lea.vmem %s2730_s0, %s1763_s22  ;;  %s2554_s21 = scalar_lea.vmem %s2739_s9, %s1765_s18 }
  0x10   : > { %v378_v8 = vld [vmem:[%s2381_s27] sm:$0xff]  ;;  %v379_v9 = vld [vmem:[%s2381_s27 + $0x8] sm:$0xff]  ;;  %v380_v10 = vld [vmem:[%s2381_s27 + $0x10] sm:$0xff]  ;;  %2101 = vmatpush3.bf16.msra.mxu1 %v2267_v7  ;;  %s2661_s14 = scalar_lea.vmem %s2740_s10, %s1763_s22 }
  0x11   : > { %v410_v11 = vpack.c.bf16 %v379_v9, %v378_v8  ;;  %v381_v12 = vld [vmem:[%s2381_s27 + $0x18] sm:$0xff]  ;;  %v382_v13 = vld [vmem:[%s2381_s27 + $0x20] sm:$0xff]  ;;  %v383_v14 = vld [vmem:[%s2381_s27 + $0x28] sm:$0xff]  ;;  %2102 = vmatprep.subr.bf16.mxu1 %v2268_v17 }
  0x12   : > { %v411_v15 = vpack.c.bf16 %v381_v12, %v380_v10  ;;  %v412_v16 = vpack.c.bf16 %v383_v14, %v382_v13  ;;  %v384_v18 = vld [vmem:[%s2381_s27 + $0x30] sm:$0xff]  ;;  %v385_v19 = vld [vmem:[%s2381_s27 + $0x38] sm:$0xff]  ;;  %v386_v20 = vld [vmem:[%s2381_s27 + $0x40] sm:$0xff] }
  0x13   : > { %2064 = vmatprep.mubr.msk.bf16.mxu0 %vm434_vm2, %v410_v11  ;;  %v387_v21 = vld [vmem:[%s2381_s27 + $0x48] sm:$0xff]  ;;  %v413_v23 = vpack.c.bf16 %v385_v19, %v384_v18  ;;  %v388_v26 = vld [vmem:[%s2381_s27 + $0x50] sm:$0xff]  ;;  %v389_v27 = vld [vmem:[%s2381_s27 + $0x58] sm:$0xff] }
  0x14   : > { %2065 = vmatmul.mubr.msk.bf16.vlgmr.msra.gmra.mrb[0].mxu0 %vm434_vm2, %v411_v15  ;;  %v414_v24 = vpack.c.bf16 %v387_v21, %v386_v20  ;;  %2103 = vmatpush3.bf16.msra.mxu1 %v2268_v17  ;;  %v390_v28 = vld [vmem:[%s2381_s27 + $0x60] sm:$0xff]  ;;  %v391_v29 = vld [vmem:[%s2381_s27 + $0x68] sm:$0xff]  ;;  %v415_v30 = vpack.c.bf16 %v389_v27, %v388_v26  ;;  %v392_v32 = vld [vmem:[%s2381_s27 + $0x70] sm:$0xff] }
  0x15   : > { %2068 = vmatprep.mubr.msk.bf16.mxu0 %vm434_vm2, %v412_v16  ;;  %2104 = vmatprep.subr.bf16.mxu1 %v2269_v22  ;;  %v416_v31 = vpack.c.bf16 %v391_v29, %v390_v28  ;;  %v393_v33 = vld [vmem:[%s2381_s27 + $0x78] sm:$0xff]  ;;  %v394_v34 = vld [vmem:[%s2381_s27 + $0x80] sm:$0xff]  ;;  %v395_v35 = vld [vmem:[%s2381_s27 + $0x88] sm:$0xff] }
  0x16   : > { %v417_v36 = vpack.c.bf16 %v393_v33, %v392_v32  ;;  %v418_v37 = vpack.c.bf16 %v395_v35, %v394_v34  ;;  %v396_v38 = vld [vmem:[%s2381_s27 + $0x90] sm:$0xff]  ;;  %v397_v39 = vld [vmem:[%s2381_s27 + $0x98] sm:$0xff]  ;;  %v398_v40 = vld [vmem:[%s2381_s27 + $0xa0] sm:$0xff]  ;;  %2145 = vmatpush3.bf16.msra.mxu0 %v2273_v61 }
  0x17   : > { %v399_v41 = vld [vmem:[%s2381_s27 + $0xa8] sm:$0xff]  ;;  %v419_v42 = vpack.c.bf16 %v397_v39, %v396_v38  ;;  %v400_v44 = vld [vmem:[%s2381_s27 + $0xb0] sm:$0xff]  ;;  %v401_v45 = vld [vmem:[%s2381_s27 + $0xb8] sm:$0xff]  ;;  %2146 = vmatprep.subr.bf16.mxu0 %v2274_v62 }
  0x18   : > { %2105 = vmatpush3.bf16.msra.mxu1 %v2269_v22  ;;  %v420_v43 = vpack.c.bf16 %v399_v41, %v398_v40  ;;  %v402_v46 = vld [vmem:[%s2381_s27 + $0xc0] sm:$0xff]  ;;  %v403_v47 = vld [vmem:[%s2381_s27 + $0xc8] sm:$0xff]  ;;  %v421_v48 = vpack.c.bf16 %v401_v45, %v400_v44  ;;  %v404_v50 = vld [vmem:[%s2381_s27 + $0xd0] sm:$0xff] }
  0x19   : > { %2106 = vmatprep.subr.bf16.mxu1 %v2270_v25  ;;  %v422_v49 = vpack.c.bf16 %v403_v47, %v402_v46  ;;  %v405_v51 = vld [vmem:[%s2381_s27 + $0xd8] sm:$0xff]  ;;  %v406_v52 = vld [vmem:[%s2381_s27 + $0xe0] sm:$0xff]  ;;  %v407_v53 = vld [vmem:[%s2381_s27 + $0xe8] sm:$0xff] }
  0x1a   : > { %v423_v54 = vpack.c.bf16 %v405_v51, %v404_v50  ;;  %v424_v55 = vpack.c.bf16 %v407_v53, %v406_v52  ;;  %v408_v56 = vld [vmem:[%s2381_s27 + $0xf0] sm:$0xff]  ;;  %v409_v57 = vld [vmem:[%s2381_s27 + $0xf8] sm:$0xff]  ;;  %2147 = vmatpush3.bf16.msra.mxu0 %v2274_v62 }
  0x1b   : > { %v425_v58 = vpack.c.bf16 %v409_v57, %v408_v56  ;;  %2148 = vmatprep.subr.bf16.mxu0 %v2275_v63 }
  0x1c   : > { %2069 = vmatmul.mubr.msk.bf16.gmra.mrb[4].mxu0 %vm434_vm2, %v413_v23  ;;  %2107 = vmatpush3.bf16.msra.mxu1 %v2270_v25 }
  0x1d   : > { %2072 = vmatprep.mubr.msk.bf16.mxu0 %vm434_vm2, %v414_v24  ;;  %2108 = vmatprep.subr.bf16.mxu1 %v2271_v59 }
  0x1e   : > { %2149 = vmatpush3.bf16.msra.mxu0 %v2275_v63 }
  0x1f   : > { %2150 = vmatprep.subr.bf16.mxu0 %v2276_v0 }
  0x20   : > { %2109 = vmatpush3.bf16.msra.mxu1 %v2271_v59 }
  0x21   : > { %2110 = vmatprep.subr.bf16.mxu1 %v2272_v60 }
  0x22   : > { %2151 = vmatpush3.bf16.msra.mxu0 %v2276_v0 }
  0x23   : > { %2152 = vmatprep.subr.bf16.mxu0 %v2277_v1 }
  0x24   : > { %2073 = vmatmul.mubr.msk.bf16.gmra.mrb[8].mxu0 %vm434_vm2, %v415_v30  ;;  %2111 = vmatpush3.bf16.msra.mxu1 %v2272_v60 }
  0x25   : > { %2076 = vmatprep.mubr.msk.bf16.mxu0 %vm434_vm2, %v416_v31 }
  0x26   : > { %2153 = vmatpush3.bf16.msra.mxu0 %v2277_v1 }
  0x27   : > { %2154 = vmatprep.subr.bf16.mxu0 %v2278_v2 }
  0x2a   : > { %2155 = vmatpush3.bf16.msra.mxu0 %v2278_v2 }
  0x2b   : > { %2156 = vmatprep.subr.bf16.mxu0 %v2279_v3 }
  0x2c   : > { %2077 = vmatmul.mubr.msk.bf16.gmra.mrb[12].mxu0 %vm434_vm2, %v417_v36 }
  0x2d   : > { %2080 = vmatprep.mubr.msk.bf16.mxu0 %vm434_vm2, %v418_v37 }
  0x2e   : > { %2157 = vmatpush3.bf16.msra.mxu0 %v2279_v3 }
  0x34   : > { %2081 = vmatmul.mubr.msk.bf16.gmra.mrb[16].mxu0 %vm434_vm2, %v419_v42 }
  0x35   : > { %2084 = vmatprep.mubr.msk.bf16.mxu0 %vm434_vm2, %v420_v43 }
  0x3c   : > { %2085 = vmatmul.mubr.msk.bf16.gmra.mrb[20].mxu0 %vm434_vm2, %v421_v48 }
  0x3d   : > { %2088 = vmatprep.mubr.msk.bf16.mxu0 %vm434_vm2, %v422_v49 }
  0x44   : > { %2089 = vmatmul.mubr.msk.bf16.gmra.mrb[24].mxu0 %vm434_vm2, %v423_v54 }
  0x45   : > { %2092 = vmatprep.mubr.msk.bf16.mxu0 %vm434_vm2, %v424_v55 }
  0x4c   : > { %2093 = vmatmul.mubr.msk.bf16.gmra.mrb[28].mxu0 %vm434_vm2, %v425_v58 }
  0xe7   : > { %v2066_v5 = vpop.f32.mrb[0].mxu0 }
  0xe8   : > { %v533_v6 = vadd.f32 %v2066_v5, %v2470_v4  ;;  %v524_v7 = vpop.f32.mrb[1].mxu0 }
  0xe9   : > { %v525_v8 = vadd.f32 %v2470_v4, %v524_v7  ;;  %v2067_v9 = vpop.f32.mrb[2].mxu0 }
  0xea   : > { %v536_v10 = vadd.f32 %v2067_v9, %v2470_v4  ;;  %v527_v11 = vpop.f32.mrb[3].mxu0  ;;  %v653_v13 = vmax.f32 %v533_v6, 0.0 }
  0xeb   : > { %v528_v12 = vadd.f32 %v2470_v4, %v527_v11  ;;  %v651_v15 = vmax.f32 %v525_v8, 0.0 }
  0xec   : > { %v654_v14 = vmax.f32 %v536_v10, 0.0 }
  0xed   : > { %v652_v16 = vmax.f32 %v528_v12, 0.0 }
  0xee   : > { %v684_v17 = vpack.c.bf16 %v654_v14, %v653_v13 }
  0xef   : > { %v2070_v18 = vpop.f32.mrb[4].mxu0  ;;  %v683_v19 = vpack.c.bf16 %v652_v16, %v651_v15 }
  0xf0   : > { %v549_v20 = vadd.f32 %v2070_v18, %v2470_v4  ;;  %v540_v21 = vpop.f32.mrb[5].mxu0 }
  0xf1   : > { %v541_v22 = vadd.f32 %v2470_v4, %v540_v21  ;;  %v2071_v23 = vpop.f32.mrb[6].mxu0  ;;  %2112 = vmatprep.mubr.bf16.mxu1 %v683_v19 }
  0xf2   : > { %v552_v24 = vadd.f32 %v2071_v23, %v2470_v4  ;;  %v543_v25 = vpop.f32.mrb[7].mxu0  ;;  %2113 = vmatmul.mubr.bf16.vlgmr.msra.gmra.mrb[0].mxu1 %v684_v17  ;;  %v657_v27 = vmax.f32 %v549_v20, 0.0 }
  0xf3   : > { %v544_v26 = vadd.f32 %v2470_v4, %v543_v25  ;;  %v655_v29 = vmax.f32 %v541_v22, 0.0 }
  0xf4   : > { %v658_v28 = vmax.f32 %v552_v24, 0.0 }
  0xf5   : > { %v656_v30 = vmax.f32 %v544_v26, 0.0 }
  0xf6   : > { %v686_v31 = vpack.c.bf16 %v658_v28, %v657_v27 }
  0xf7   : > { %v685_v32 = vpack.c.bf16 %v656_v30, %v655_v29  ;;  %v2074_v33 = vpop.f32.mrb[8].mxu0 }
  0xf8   : > { %v565_v34 = vadd.f32 %v2074_v33, %v2470_v4  ;;  %v556_v35 = vpop.f32.mrb[9].mxu0 }
  0xf9   : > { %v557_v36 = vadd.f32 %v2470_v4, %v556_v35  ;;  %v2075_v37 = vpop.f32.mrb[10].mxu0  ;;  %2116 = vmatprep.mubr.bf16.mxu1 %v685_v32 }
  0xfa   : > { %v568_v38 = vadd.f32 %v2075_v37, %v2470_v4  ;;  %v559_v39 = vpop.f32.mrb[11].mxu0  ;;  %2117 = vmatmul.mubr.bf16.gmra.mrb[4].mxu1 %v686_v31  ;;  %v661_v41 = vmax.f32 %v565_v34, 0.0 }
  0xfb   : > { %v560_v40 = vadd.f32 %v2470_v4, %v559_v39  ;;  %v659_v43 = vmax.f32 %v557_v36, 0.0 }
  0xfc   : > { %v662_v42 = vmax.f32 %v568_v38, 0.0 }
  0xfd   : > { %v660_v44 = vmax.f32 %v560_v40, 0.0 }
  0xfe   : > { %v688_v45 = vpack.c.bf16 %v662_v42, %v661_v41 }
  0xff   : > { %v687_v46 = vpack.c.bf16 %v660_v44, %v659_v43  ;;  %v2078_v47 = vpop.f32.mrb[12].mxu0 }
 0x100   : > { %v581_v48 = vadd.f32 %v2078_v47, %v2470_v4  ;;  %v572_v49 = vpop.f32.mrb[13].mxu0 }
 0x101   : > { %v573_v50 = vadd.f32 %v2470_v4, %v572_v49  ;;  %v2079_v51 = vpop.f32.mrb[14].mxu0  ;;  %2120 = vmatprep.mubr.bf16.mxu1 %v687_v46 }
 0x102   : > { %v584_v52 = vadd.f32 %v2079_v51, %v2470_v4  ;;  %v575_v53 = vpop.f32.mrb[15].mxu0  ;;  %2121 = vmatmul.mubr.bf16.gmra.mrb[8].mxu1 %v688_v45  ;;  %v665_v55 = vmax.f32 %v581_v48, 0.0 }
 0x103   : > { %v576_v54 = vadd.f32 %v2470_v4, %v575_v53  ;;  %v663_v57 = vmax.f32 %v573_v50, 0.0 }
 0x104   : > { %v666_v56 = vmax.f32 %v584_v52, 0.0 }
 0x105   : > { %v664_v58 = vmax.f32 %v576_v54, 0.0  ;;  %v2280_v54 = vld [vmem:[%s2735_s5 + $0x38] sm:$0xff]  }
 0x106   : > { %v690_v59 = vpack.c.bf16 %v666_v56, %v665_v55  ;;  %2158 = vmatprep.subr.bf16.mxu0 %v2280_v54  ;;  %v2281_v55 = vld [vmem:[%s2737_s7] sm:$0xff]   ;;  %v2516_v56 = vld [vmem:[%s2737_s7 + $0x10] sm:$0xff]  }
 0x107   : > { %v689_v60 = vpack.c.bf16 %v664_v58, %v663_v57  ;;  %v2082_v61 = vpop.f32.mrb[16].mxu0  ;;  %2159 = vmatpush3.bf16.msra.mxu0 %v2280_v54  ;;  %2240 = vmatprep.subr.bf16.mxu1 %v2281_v55  ;;  %v2522_v57 = vld [vmem:[%s2737_s7 + $0x18] sm:$0xff]   ;;  %v2529_v58 = vld [vmem:[%s2737_s7 + $0x20] sm:$0xff]  }
 0x108   : > { %v597_v62 = vadd.f32 %v2082_v61, %v2470_v4  ;;  %v588_v63 = vpop.f32.mrb[17].mxu0  ;;  %2192 = vmatprep.subr.bf16.mxu0 %v2281_v55  ;;  %2248 = vmatpush3.bf16.msra.mxu1 %v2281_v55 }
 0x109   : > { %v589_v0 = vadd.f32 %v2470_v4, %v588_v63  ;;  %v2083_v1 = vpop.f32.mrb[18].mxu0  ;;  %2124 = vmatprep.mubr.bf16.mxu1 %v689_v60  ;;  %v2544_v60 = vld [vmem:[%s2734_s4] ss:$0 sm:$0xff] }
 0x10a   : > { %v600_v2 = vadd.f32 %v2083_v1, %v2470_v4  ;;  %v591_v3 = vpop.f32.mrb[19].mxu0  ;;  %2125 = vmatmul.mubr.bf16.gmra.mrb[12].mxu1 %v690_v59  ;;  %v669_v6 = vmax.f32 %v597_v62, 0.0  ;;  %v2536_v59 = vld [vmem:[%s2737_s7 + $0x28] sm:$0xff]  }
 0x10b   : > { %v592_v5 = vadd.f32 %v2470_v4, %v591_v3  ;;  %v667_v8 = vmax.f32 %v589_v0, 0.0 }
 0x10c   : > { %v670_v7 = vmax.f32 %v600_v2, 0.0 }
 0x10d   : > { %v668_v9 = vmax.f32 %v592_v5, 0.0 }
 0x10e   : > { %v692_v10 = vpack.c.bf16 %v670_v7, %v669_v6 }
 0x10f   : > { %v691_v11 = vpack.c.bf16 %v668_v9, %v667_v8  ;;  %v2086_v12 = vpop.f32.mrb[20].mxu0 }
 0x110   : > { %v613_v13 = vadd.f32 %v2086_v12, %v2470_v4  ;;  %v604_v14 = vpop.f32.mrb[21].mxu0 }
 0x111   : > { %v605_v15 = vadd.f32 %v2470_v4, %v604_v14  ;;  %v2087_v16 = vpop.f32.mrb[22].mxu0  ;;  %2128 = vmatprep.mubr.bf16.mxu1 %v691_v11 }
 0x112   : > { %v616_v17 = vadd.f32 %v2087_v16, %v2470_v4  ;;  %v607_v18 = vpop.f32.mrb[23].mxu0  ;;  %2129 = vmatmul.mubr.bf16.gmra.mrb[16].mxu1 %v692_v10  ;;  %v673_v20 = vmax.f32 %v613_v13, 0.0 }
 0x113   : > { %v608_v19 = vadd.f32 %v2470_v4, %v607_v18  ;;  %v671_v22 = vmax.f32 %v605_v15, 0.0 }
 0x114   : > { %v674_v21 = vmax.f32 %v616_v17, 0.0 }
 0x115   : > { %v672_v23 = vmax.f32 %v608_v19, 0.0 }
 0x116   : > { %v694_v24 = vpack.c.bf16 %v674_v21, %v673_v20 }
 0x117   : > { %v693_v25 = vpack.c.bf16 %v672_v23, %v671_v22  ;;  %v2090_v26 = vpop.f32.mrb[24].mxu0 }
 0x118   : > { %v629_v27 = vadd.f32 %v2090_v26, %v2470_v4  ;;  %v620_v28 = vpop.f32.mrb[25].mxu0 }
 0x119   : > { %v621_v29 = vadd.f32 %v2470_v4, %v620_v28  ;;  %v2091_v30 = vpop.f32.mrb[26].mxu0  ;;  %2132 = vmatprep.mubr.bf16.mxu1 %v693_v25 }
 0x11a   : > { %v632_v31 = vadd.f32 %v2091_v30, %v2470_v4  ;;  %v623_v32 = vpop.f32.mrb[27].mxu0  ;;  %2133 = vmatmul.mubr.bf16.gmra.mrb[20].mxu1 %v694_v24  ;;  %v677_v34 = vmax.f32 %v629_v27, 0.0 }
 0x11b   : > { %v624_v33 = vadd.f32 %v2470_v4, %v623_v32  ;;  %v675_v36 = vmax.f32 %v621_v29, 0.0 }
 0x11c   : > { %v678_v35 = vmax.f32 %v632_v31, 0.0 }
 0x11d   : > { %v676_v37 = vmax.f32 %v624_v33, 0.0 }
 0x11e   : > { %v696_v38 = vpack.c.bf16 %v678_v35, %v677_v34 }
 0x11f   : > { %v695_v39 = vpack.c.bf16 %v676_v37, %v675_v36  ;;  %v2094_v40 = vpop.f32.mrb[28].mxu0 }
 0x120   : > { %v645_v41 = vadd.f32 %v2094_v40, %v2470_v4  ;;  %v636_v42 = vpop.f32.mrb[29].mxu0 }
 0x121   : > { %v637_v43 = vadd.f32 %v2470_v4, %v636_v42  ;;  %v2095_v44 = vpop.f32.mrb[30].mxu0  ;;  %2136 = vmatprep.mubr.bf16.mxu1 %v695_v39 }
 0x122   : > { %v648_v45 = vadd.f32 %v2095_v44, %v2470_v4  ;;  %v639_v46 = vpop.f32.mrb[31].mxu0  ;;  %2137 = vmatmul.mubr.bf16.gmra.mrb[24].mxu1 %v696_v38  ;;  %v681_v48 = vmax.f32 %v645_v41, 0.0 }
 0x123   : > { %v640_v47 = vadd.f32 %v2470_v4, %v639_v46  ;;  %v679_v50 = vmax.f32 %v637_v43, 0.0  ;;  %v2282_v4 = vld [vmem:[%s2737_s7 + $0x8] sm:$0xff]  }
 0x124   : > { %v682_v49 = vmax.f32 %v648_v45, 0.0  ;;  %2241 = vmatprep.subr.bf16.mxu1 %v2282_v4 }
 0x125   : > { %v680_v51 = vmax.f32 %v640_v47, 0.0  ;;  %2249 = vmatpush3.bf16.msra.mxu1 %v2282_v4 }
 0x126   : > { %v698_v52 = vpack.c.bf16 %v682_v49, %v681_v48  ;;  %2242 = vmatprep.subr.bf16.mxu1 %v2516_v56 }
 0x127   : > { %v697_v53 = vpack.c.bf16 %v680_v51, %v679_v50 }
 0x129   : > { %2140 = vmatprep.mubr.bf16.mxu1 %v697_v53  ;;  %2250 = vmatpush3.bf16.msra.mxu1 %v2516_v56 }
 0x12a   : > { %2141 = vmatmul.mubr.bf16.gmra.mrb[28].mxu1 %v698_v52  ;;  %2243 = vmatprep.subr.bf16.mxu1 %v2522_v57 }
 0x12d   : > { %2251 = vmatpush3.bf16.msra.mxu1 %v2522_v57 }
 0x12e   : > { %2244 = vmatprep.subr.bf16.mxu1 %v2529_v58 }
 0x131   : > { %2252 = vmatpush3.bf16.msra.mxu1 %v2529_v58 }
 0x132   : > { %2245 = vmatprep.subr.bf16.mxu1 %v2536_v59 }
 0x135   : > { %2253 = vmatpush3.bf16.msra.mxu1 %v2536_v59 }
 0x1c5   : > { %v2114_v61 = vpop.f32.mrb[0].mxu1 }
 0x1c6   : > { %v813_v62 = vadd.f32 %v2114_v61, %v2544_v60  ;;  %v804_v63 = vpop.f32.mrb[1].mxu1 }
 0x1c7   : > { %v805_v0 = vadd.f32 %v2544_v60, %v804_v63  ;;  %v2115_v1 = vpop.f32.mrb[2].mxu1 }
 0x1c8   : > { %v816_v2 = vadd.f32 %v2115_v1, %v2544_v60  ;;  %v807_v3 = vpop.f32.mrb[3].mxu1  ;;  %v933_v6 = vmax.f32 %v813_v62, 0.0 }
 0x1c9   : > { %v808_v5 = vadd.f32 %v2544_v60, %v807_v3  ;;  %v931_v8 = vmax.f32 %v805_v0, 0.0 }
 0x1ca   : > { %v934_v7 = vmax.f32 %v816_v2, 0.0 }
 0x1cb   : > { %v932_v9 = vmax.f32 %v808_v5, 0.0 }
 0x1cc   : > { %v964_v10 = vpack.c.bf16 %v934_v7, %v933_v6 }
 0x1cd   : > { %v963_v11 = vpack.c.bf16 %v932_v9, %v931_v8  ;;  %v2118_v12 = vpop.f32.mrb[4].mxu1 }
 0x1ce   : > { %1958 = vst [vmem:[%s2554_s21 + $0x8] sm:$0xff] %v964_v10   ;;  %v829_v13 = vadd.f32 %v2118_v12, %v2544_v60  ;;  %v820_v14 = vpop.f32.mrb[5].mxu1 }
 0x1cf   : > { %1882 = vst [vmem:[%s2554_s21] sm:$0xff] %v963_v11   ;;  %v821_v15 = vadd.f32 %v2544_v60, %v820_v14  ;;  %v2119_v16 = vpop.f32.mrb[6].mxu1  ;;  %2160 = vmatprep.mubr.bf16.mxu0 %v963_v11 }
 0x1d0   : > { %v832_v17 = vadd.f32 %v2119_v16, %v2544_v60  ;;  %v823_v18 = vpop.f32.mrb[7].mxu1  ;;  %2161 = vmatmul.mubr.bf16.vlgmr.msra.gmra.mrb[32].mxu0 %v964_v10  ;;  %v937_v20 = vmax.f32 %v829_v13, 0.0 }
 0x1d1   : > { %v824_v19 = vadd.f32 %v2544_v60, %v823_v18  ;;  %2193 = vmatpush3.bf16.msra.mxu0 %v2281_v55  ;;  %v935_v22 = vmax.f32 %v821_v15, 0.0 }
 0x1d2   : > { %v938_v21 = vmax.f32 %v832_v17, 0.0  ;;  %2194 = vmatprep.subr.bf16.mxu0 %v2282_v4 }
 0x1d3   : > { %v936_v23 = vmax.f32 %v824_v19, 0.0 }
 0x1d4   : > { %v966_v24 = vpack.c.bf16 %v938_v21, %v937_v20 }
 0x1d5   : > { %v965_v25 = vpack.c.bf16 %v936_v23, %v935_v22  ;;  %v2122_v26 = vpop.f32.mrb[8].mxu1  ;;  %2195 = vmatpush3.bf16.msra.mxu0 %v2282_v4 }
 0x1d6   : > { %1960 = vst [vmem:[%s2554_s21 + $0x18] sm:$0xff] %v966_v24   ;;  %v845_v27 = vadd.f32 %v2122_v26, %v2544_v60  ;;  %v836_v28 = vpop.f32.mrb[9].mxu1  ;;  %2196 = vmatprep.subr.bf16.mxu0 %v2516_v56 }
 0x1d7   : > { %1959 = vst [vmem:[%s2554_s21 + $0x10] sm:$0xff] %v965_v25   ;;  %v837_v29 = vadd.f32 %v2544_v60, %v836_v28  ;;  %v2123_v30 = vpop.f32.mrb[10].mxu1  ;;  %2164 = vmatprep.mubr.bf16.mxu0 %v965_v25 }
 0x1d8   : > { %v848_v31 = vadd.f32 %v2123_v30, %v2544_v60  ;;  %v839_v32 = vpop.f32.mrb[11].mxu1  ;;  %2165 = vmatmul.mubr.bf16.gmra.mrb[36].mxu0 %v966_v24  ;;  %v941_v34 = vmax.f32 %v845_v27, 0.0 }
 0x1d9   : > { %v840_v33 = vadd.f32 %v2544_v60, %v839_v32  ;;  %2197 = vmatpush3.bf16.msra.mxu0 %v2516_v56  ;;  %v939_v36 = vmax.f32 %v837_v29, 0.0 }
 0x1da   : > { %v942_v35 = vmax.f32 %v848_v31, 0.0  ;;  %2198 = vmatprep.subr.bf16.mxu0 %v2522_v57 }
 0x1db   : > { %v940_v37 = vmax.f32 %v840_v33, 0.0 }
 0x1dc   : > { %v968_v38 = vpack.c.bf16 %v942_v35, %v941_v34 }
 0x1dd   : > { %v967_v39 = vpack.c.bf16 %v940_v37, %v939_v36  ;;  %v2126_v40 = vpop.f32.mrb[12].mxu1  ;;  %2199 = vmatpush3.bf16.msra.mxu0 %v2522_v57 }
 0x1de   : > { %1962 = vst [vmem:[%s2554_s21 + $0x28] sm:$0xff] %v968_v38   ;;  %v861_v41 = vadd.f32 %v2126_v40, %v2544_v60  ;;  %v852_v42 = vpop.f32.mrb[13].mxu1  ;;  %2200 = vmatprep.subr.bf16.mxu0 %v2529_v58 }
 0x1df   : > { %1961 = vst [vmem:[%s2554_s21 + $0x20] sm:$0xff] %v967_v39   ;;  %v853_v43 = vadd.f32 %v2544_v60, %v852_v42  ;;  %v2127_v44 = vpop.f32.mrb[14].mxu1  ;;  %2168 = vmatprep.mubr.bf16.mxu0 %v967_v39 }
 0x1e0   : > { %v864_v45 = vadd.f32 %v2127_v44, %v2544_v60  ;;  %v855_v46 = vpop.f32.mrb[15].mxu1  ;;  %2169 = vmatmul.mubr.bf16.gmra.mrb[40].mxu0 %v968_v38  ;;  %v945_v48 = vmax.f32 %v861_v41, 0.0 }
 0x1e1   : > { %v856_v47 = vadd.f32 %v2544_v60, %v855_v46  ;;  %2201 = vmatpush3.bf16.msra.mxu0 %v2529_v58  ;;  %v943_v50 = vmax.f32 %v853_v43, 0.0 }
 0x1e2   : > { %v946_v49 = vmax.f32 %v864_v45, 0.0  ;;  %2202 = vmatprep.subr.bf16.mxu0 %v2536_v59 }
 0x1e3   : > { %v944_v51 = vmax.f32 %v856_v47, 0.0  ;;  %v2287_v47 = vld [vmem:[%s2737_s7 + $0x30] sm:$0xff]  }
 0x1e4   : > { %v970_v52 = vpack.c.bf16 %v946_v49, %v945_v48  ;;  %2246 = vmatprep.subr.bf16.mxu1 %v2287_v47  ;;  %v2617_v48 = vld [vmem:[%s2736_s6] ss:$0 sm:$0xff] }
 0x1e5   : > { %v969_v53 = vpack.c.bf16 %v944_v51, %v943_v50  ;;  %v2130_v54 = vpop.f32.mrb[16].mxu1  ;;  %2203 = vmatpush3.bf16.msra.mxu0 %v2536_v59  ;;  %2254 = vmatpush3.bf16.msra.mxu1 %v2287_v47 }
 0x1e6   : > { %1964 = vst [vmem:[%s2554_s21 + $0x38] sm:$0xff] %v970_v52   ;;  %v877_v55 = vadd.f32 %v2130_v54, %v2544_v60  ;;  %v868_v4 = vpop.f32.mrb[17].mxu1  ;;  %2204 = vmatprep.subr.bf16.mxu0 %v2287_v47 }
 0x1e7   : > { %1963 = vst [vmem:[%s2554_s21 + $0x30] sm:$0xff] %v969_v53   ;;  %v869_v56 = vadd.f32 %v2544_v60, %v868_v4  ;;  %v2131_v57 = vpop.f32.mrb[18].mxu1  ;;  %2172 = vmatprep.mubr.bf16.mxu0 %v969_v53 }
 0x1e8   : > { %v880_v58 = vadd.f32 %v2131_v57, %v2544_v60  ;;  %v871_v61 = vpop.f32.mrb[19].mxu1  ;;  %2173 = vmatmul.mubr.bf16.gmra.mrb[44].mxu0 %v970_v52  ;;  %v949_v63 = vmax.f32 %v877_v55, 0.0 }
 0x1e9   : > { %v872_v62 = vadd.f32 %v2544_v60, %v871_v61  ;;  %v947_v59 = vmax.f32 %v869_v56, 0.0  ;;  %2205 = vmatpush3.bf16.msra.mxu0 %v2287_v47 }
 0x1ea   : > { %v950_v0 = vmax.f32 %v880_v58, 0.0 }
 0x1eb   : > { %v948_v1 = vmax.f32 %v872_v62, 0.0 }
 0x1ec   : > { %v972_v2 = vpack.c.bf16 %v950_v0, %v949_v63 }
 0x1ed   : > { %v971_v3 = vpack.c.bf16 %v948_v1, %v947_v59  ;;  %v2134_v5 = vpop.f32.mrb[20].mxu1 }
 0x1ee   : > { %1966 = vst [vmem:[%s2554_s21 + $0x48] sm:$0xff] %v972_v2   ;;  %v893_v6 = vadd.f32 %v2134_v5, %v2544_v60  ;;  %v884_v7 = vpop.f32.mrb[21].mxu1 }
 0x1ef   : > { %1965 = vst [vmem:[%s2554_s21 + $0x40] sm:$0xff] %v971_v3   ;;  %v885_v8 = vadd.f32 %v2544_v60, %v884_v7  ;;  %v2135_v9 = vpop.f32.mrb[22].mxu1  ;;  %2176 = vmatprep.mubr.bf16.mxu0 %v971_v3 }
 0x1f0   : > { %v896_v10 = vadd.f32 %v2135_v9, %v2544_v60  ;;  %v887_v11 = vpop.f32.mrb[23].mxu1  ;;  %2177 = vmatmul.mubr.bf16.gmra.mrb[48].mxu0 %v972_v2  ;;  %v953_v13 = vmax.f32 %v893_v6, 0.0 }
 0x1f1   : > { %v888_v12 = vadd.f32 %v2544_v60, %v887_v11  ;;  %v951_v15 = vmax.f32 %v885_v8, 0.0 }
 0x1f2   : > { %v954_v14 = vmax.f32 %v896_v10, 0.0 }
 0x1f3   : > { %v952_v16 = vmax.f32 %v888_v12, 0.0 }
 0x1f4   : > { %v974_v17 = vpack.c.bf16 %v954_v14, %v953_v13 }
 0x1f5   : > { %v973_v18 = vpack.c.bf16 %v952_v16, %v951_v15  ;;  %v2138_v19 = vpop.f32.mrb[24].mxu1 }
 0x1f6   : > { %1968 = vst [vmem:[%s2554_s21 + $0x58] sm:$0xff] %v974_v17   ;;  %v909_v20 = vadd.f32 %v2138_v19, %v2544_v60  ;;  %v900_v21 = vpop.f32.mrb[25].mxu1 }
 0x1f7   : > { %1967 = vst [vmem:[%s2554_s21 + $0x50] sm:$0xff] %v973_v18   ;;  %v901_v22 = vadd.f32 %v2544_v60, %v900_v21  ;;  %v2139_v23 = vpop.f32.mrb[26].mxu1  ;;  %2180 = vmatprep.mubr.bf16.mxu0 %v973_v18 }
 0x1f8   : > { %v912_v24 = vadd.f32 %v2139_v23, %v2544_v60  ;;  %v903_v25 = vpop.f32.mrb[27].mxu1  ;;  %2181 = vmatmul.mubr.bf16.gmra.mrb[52].mxu0 %v974_v17  ;;  %v957_v27 = vmax.f32 %v909_v20, 0.0 }
 0x1f9   : > { %v904_v26 = vadd.f32 %v2544_v60, %v903_v25  ;;  %v955_v29 = vmax.f32 %v901_v22, 0.0 }
 0x1fa   : > { %v958_v28 = vmax.f32 %v912_v24, 0.0 }
 0x1fb   : > { %v956_v30 = vmax.f32 %v904_v26, 0.0 }
 0x1fc   : > { %v976_v31 = vpack.c.bf16 %v958_v28, %v957_v27 }
 0x1fd   : > { %v975_v32 = vpack.c.bf16 %v956_v30, %v955_v29  ;;  %v2142_v33 = vpop.f32.mrb[28].mxu1 }
 0x1fe   : > { %1970 = vst [vmem:[%s2554_s21 + $0x68] sm:$0xff] %v976_v31   ;;  %v925_v34 = vadd.f32 %v2142_v33, %v2544_v60  ;;  %v916_v35 = vpop.f32.mrb[29].mxu1 }
 0x1ff   : > { %1969 = vst [vmem:[%s2554_s21 + $0x60] sm:$0xff] %v975_v32   ;;  %v917_v36 = vadd.f32 %v2544_v60, %v916_v35  ;;  %v2143_v37 = vpop.f32.mrb[30].mxu1  ;;  %2184 = vmatprep.mubr.bf16.mxu0 %v975_v32 }
 0x200   : > { %v928_v38 = vadd.f32 %v2143_v37, %v2544_v60  ;;  %v919_v39 = vpop.f32.mrb[31].mxu1  ;;  %2185 = vmatmul.mubr.bf16.gmra.mrb[56].mxu0 %v976_v31  ;;  %v961_v41 = vmax.f32 %v925_v34, 0.0 }
 0x201   : > { %v920_v40 = vadd.f32 %v2544_v60, %v919_v39  ;;  %v959_v43 = vmax.f32 %v917_v36, 0.0  ;;  %v2288_v60 = vld [vmem:[%s2737_s7 + $0x38] sm:$0xff]  }
 0x202   : > { %v962_v42 = vmax.f32 %v928_v38, 0.0  ;;  %2206 = vmatprep.subr.bf16.mxu0 %v2288_v60  ;;  %2247 = vmatprep.subr.bf16.mxu1 %v2288_v60 }
 0x203   : > { %v960_v44 = vmax.f32 %v920_v40, 0.0  ;;  %2207 = vmatpush3.bf16.msra.mxu0 %v2288_v60  ;;  %2255 = vmatpush3.bf16.msra.mxu1 %v2288_v60 }
 0x204   : > { %v978_v45 = vpack.c.bf16 %v962_v42, %v961_v41 }
 0x205   : > { %v977_v46 = vpack.c.bf16 %v960_v44, %v959_v43 }
 0x206   : > { %1972 = vst [vmem:[%s2554_s21 + $0x78] sm:$0xff] %v978_v45  }
 0x207   : > { %1971 = vst [vmem:[%s2554_s21 + $0x70] sm:$0xff] %v977_v46   ;;  %2188 = vmatprep.mubr.bf16.mxu0 %v977_v46 }
 0x208   : > { %2189 = vmatmul.mubr.bf16.gmra.mrb[60].mxu0 %v978_v45 }
 0x2a3   : > { %v2162_v49 = vpop.f32.mrb[32].mxu0 }
 0x2a4   : > { %v1093_v50 = vadd.f32 %v2162_v49, %v2617_v48  ;;  %v1084_v51 = vpop.f32.mrb[33].mxu0 }
 0x2a5   : > { %v1085_v52 = vadd.f32 %v2617_v48, %v1084_v51  ;;  %v2163_v53 = vpop.f32.mrb[34].mxu0 }
 0x2a6   : > { %v1096_v54 = vadd.f32 %v2163_v53, %v2617_v48  ;;  %v1087_v55 = vpop.f32.mrb[35].mxu0  ;;  %v1213_v56 = vmax.f32 %v1093_v50, 0.0 }
 0x2a7   : > { %v1088_v4 = vadd.f32 %v2617_v48, %v1087_v55  ;;  %v1211_v58 = vmax.f32 %v1085_v52, 0.0 }
 0x2a8   : > { %v1214_v57 = vmax.f32 %v1096_v54, 0.0 }
 0x2a9   : > { %v1212_v61 = vmax.f32 %v1088_v4, 0.0 }
 0x2aa   : > { %v1244_v62 = vpack.c.bf16 %v1214_v57, %v1213_v56 }
 0x2ab   : > { %v1243_v63 = vpack.c.bf16 %v1212_v61, %v1211_v58  ;;  %v2166_v0 = vpop.f32.mrb[36].mxu0 }
 0x2ac   : > { %v1109_v59 = vadd.f32 %v2166_v0, %v2617_v48  ;;  %v1100_v1 = vpop.f32.mrb[37].mxu0 }
 0x2ad   : > { %v1101_v2 = vadd.f32 %v2617_v48, %v1100_v1  ;;  %v2167_v3 = vpop.f32.mrb[38].mxu0  ;;  %2208 = vmatprep.mubr.bf16.mxu0 %v1243_v63 }
 0x2ae   : > { %v1112_v5 = vadd.f32 %v2167_v3, %v2617_v48  ;;  %v1103_v6 = vpop.f32.mrb[39].mxu0  ;;  %2209 = vmatmul.mubr.bf16.vlgmr.msra.gmra.mrb[64].mxu0 %v1244_v62  ;;  %v1217_v8 = vmax.f32 %v1109_v59, 0.0 }
 0x2af   : > { %v1104_v7 = vadd.f32 %v2617_v48, %v1103_v6  ;;  %v1215_v10 = vmax.f32 %v1101_v2, 0.0 }
 0x2b0   : > { %v1218_v9 = vmax.f32 %v1112_v5, 0.0 }
 0x2b1   : > { %v1216_v11 = vmax.f32 %v1104_v7, 0.0 }
 0x2b2   : > { %v1246_v12 = vpack.c.bf16 %v1218_v9, %v1217_v8 }
 0x2b3   : > { %v1245_v13 = vpack.c.bf16 %v1216_v11, %v1215_v10  ;;  %v2170_v14 = vpop.f32.mrb[40].mxu0 }
 0x2b4   : > { %v1125_v15 = vadd.f32 %v2170_v14, %v2617_v48  ;;  %v1116_v16 = vpop.f32.mrb[41].mxu0 }
 0x2b5   : > { %v1117_v17 = vadd.f32 %v2617_v48, %v1116_v16  ;;  %v2171_v18 = vpop.f32.mrb[42].mxu0  ;;  %2212 = vmatprep.mubr.bf16.mxu1 %v1245_v13 }
 0x2b6   : > { %v1128_v19 = vadd.f32 %v2171_v18, %v2617_v48  ;;  %v1119_v20 = vpop.f32.mrb[43].mxu0  ;;  %2213 = vmatmul.mubr.bf16.vlgmr.msra.gmra.mrb[32].mxu1 %v1246_v12  ;;  %v1221_v22 = vmax.f32 %v1125_v15, 0.0 }
 0x2b7   : > { %v1120_v21 = vadd.f32 %v2617_v48, %v1119_v20  ;;  %v1219_v24 = vmax.f32 %v1117_v17, 0.0 }
 0x2b8   : > { %v1222_v23 = vmax.f32 %v1128_v19, 0.0 }
 0x2b9   : > { %v1220_v25 = vmax.f32 %v1120_v21, 0.0 }
 0x2ba   : > { %v1248_v26 = vpack.c.bf16 %v1222_v23, %v1221_v22 }
 0x2bb   : > { %v1247_v27 = vpack.c.bf16 %v1220_v25, %v1219_v24  ;;  %v2174_v28 = vpop.f32.mrb[44].mxu0 }
 0x2bc   : > { %v1141_v29 = vadd.f32 %v2174_v28, %v2617_v48  ;;  %v1132_v30 = vpop.f32.mrb[45].mxu0 }
 0x2bd   : > { %v1133_v31 = vadd.f32 %v2617_v48, %v1132_v30  ;;  %v2175_v32 = vpop.f32.mrb[46].mxu0  ;;  %2216 = vmatprep.mubr.bf16.mxu1 %v1247_v27 }
 0x2be   : > { %v1144_v33 = vadd.f32 %v2175_v32, %v2617_v48  ;;  %v1135_v34 = vpop.f32.mrb[47].mxu0  ;;  %2217 = vmatmul.mubr.bf16.gmra.mrb[36].mxu1 %v1248_v26  ;;  %v1225_v36 = vmax.f32 %v1141_v29, 0.0 }
 0x2bf   : > { %v1136_v35 = vadd.f32 %v2617_v48, %v1135_v34  ;;  %v1223_v38 = vmax.f32 %v1133_v31, 0.0 }
 0x2c0   : > { %v1226_v37 = vmax.f32 %v1144_v33, 0.0 }
 0x2c1   : > { %v1224_v39 = vmax.f32 %v1136_v35, 0.0  ;;  %v2654_v35 = vld [vmem:[%s2738_s8] ss:$0 sm:$0xff] }
 0x2c2   : > { %v1250_v40 = vpack.c.bf16 %v1226_v37, %v1225_v36 }
 0x2c3   : > { %v1249_v41 = vpack.c.bf16 %v1224_v39, %v1223_v38  ;;  %v2178_v42 = vpop.f32.mrb[48].mxu0 }
 0x2c4   : > { %v1157_v43 = vadd.f32 %v2178_v42, %v2617_v48  ;;  %v1148_v44 = vpop.f32.mrb[49].mxu0 }
 0x2c5   : > { %v1149_v45 = vadd.f32 %v2617_v48, %v1148_v44  ;;  %v2179_v46 = vpop.f32.mrb[50].mxu0  ;;  %2220 = vmatprep.mubr.bf16.mxu1 %v1249_v41 }
 0x2c6   : > { %v1160_v47 = vadd.f32 %v2179_v46, %v2617_v48  ;;  %v1151_v60 = vpop.f32.mrb[51].mxu0  ;;  %2221 = vmatmul.mubr.bf16.gmra.mrb[40].mxu1 %v1250_v40  ;;  %v1229_v50 = vmax.f32 %v1157_v43, 0.0 }
 0x2c7   : > { %v1152_v49 = vadd.f32 %v2617_v48, %v1151_v60  ;;  %v1227_v52 = vmax.f32 %v1149_v45, 0.0 }
 0x2c8   : > { %v1230_v51 = vmax.f32 %v1160_v47, 0.0 }
 0x2c9   : > { %v1228_v53 = vmax.f32 %v1152_v49, 0.0 }
 0x2ca   : > { %v1252_v54 = vpack.c.bf16 %v1230_v51, %v1229_v50 }
 0x2cb   : > { %v1251_v55 = vpack.c.bf16 %v1228_v53, %v1227_v52  ;;  %v2182_v4 = vpop.f32.mrb[52].mxu0 }
 0x2cc   : > { %v1173_v56 = vadd.f32 %v2182_v4, %v2617_v48  ;;  %v1164_v57 = vpop.f32.mrb[53].mxu0 }
 0x2cd   : > { %v1165_v58 = vadd.f32 %v2617_v48, %v1164_v57  ;;  %v2183_v61 = vpop.f32.mrb[54].mxu0  ;;  %2224 = vmatprep.mubr.bf16.mxu1 %v1251_v55 }
 0x2ce   : > { %v1176_v62 = vadd.f32 %v2183_v61, %v2617_v48  ;;  %v1167_v63 = vpop.f32.mrb[55].mxu0  ;;  %2225 = vmatmul.mubr.bf16.gmra.mrb[44].mxu1 %v1252_v54  ;;  %v1233_v59 = vmax.f32 %v1173_v56, 0.0 }
 0x2cf   : > { %v1168_v0 = vadd.f32 %v2617_v48, %v1167_v63  ;;  %v1231_v2 = vmax.f32 %v1165_v58, 0.0 }
 0x2d0   : > { %v1234_v1 = vmax.f32 %v1176_v62, 0.0 }
 0x2d1   : > { %v1232_v3 = vmax.f32 %v1168_v0, 0.0 }
 0x2d2   : > { %v1254_v5 = vpack.c.bf16 %v1234_v1, %v1233_v59 }
 0x2d3   : > { %v1253_v6 = vpack.c.bf16 %v1232_v3, %v1231_v2  ;;  %v2186_v7 = vpop.f32.mrb[56].mxu0 }
 0x2d4   : > { %v1189_v8 = vadd.f32 %v2186_v7, %v2617_v48  ;;  %v1180_v9 = vpop.f32.mrb[57].mxu0 }
 0x2d5   : > { %v1181_v10 = vadd.f32 %v2617_v48, %v1180_v9  ;;  %v2187_v11 = vpop.f32.mrb[58].mxu0  ;;  %2228 = vmatprep.mubr.bf16.mxu1 %v1253_v6 }
 0x2d6   : > { %v1192_v12 = vadd.f32 %v2187_v11, %v2617_v48  ;;  %v1183_v13 = vpop.f32.mrb[59].mxu0  ;;  %2229 = vmatmul.mubr.bf16.gmra.mrb[48].mxu1 %v1254_v5  ;;  %v1237_v15 = vmax.f32 %v1189_v8, 0.0 }
 0x2d7   : > { %v1184_v14 = vadd.f32 %v2617_v48, %v1183_v13  ;;  %v1235_v17 = vmax.f32 %v1181_v10, 0.0 }
 0x2d8   : > { %v1238_v16 = vmax.f32 %v1192_v12, 0.0 }
 0x2d9   : > { %v1236_v18 = vmax.f32 %v1184_v14, 0.0 }
 0x2da   : > { %v1256_v19 = vpack.c.bf16 %v1238_v16, %v1237_v15 }
 0x2db   : > { %v1255_v20 = vpack.c.bf16 %v1236_v18, %v1235_v17  ;;  %v2190_v21 = vpop.f32.mrb[60].mxu0 }
 0x2dc   : > { %v1205_v22 = vadd.f32 %v2190_v21, %v2617_v48  ;;  %v1196_v23 = vpop.f32.mrb[61].mxu0 }
 0x2dd   : > { %v1197_v24 = vadd.f32 %v2617_v48, %v1196_v23  ;;  %v2191_v25 = vpop.f32.mrb[62].mxu0  ;;  %2232 = vmatprep.mubr.bf16.mxu1 %v1255_v20 }
 0x2de   : > { %v1208_v26 = vadd.f32 %v2191_v25, %v2617_v48  ;;  %v1199_v27 = vpop.f32.mrb[63].mxu0  ;;  %2233 = vmatmul.mubr.bf16.gmra.mrb[52].mxu1 %v1256_v19  ;;  %v1241_v29 = vmax.f32 %v1205_v22, 0.0 }
 0x2df   : > { %v1200_v28 = vadd.f32 %v2617_v48, %v1199_v27  ;;  %v1239_v31 = vmax.f32 %v1197_v24, 0.0 }
 0x2e0   : > { %v1242_v30 = vmax.f32 %v1208_v26, 0.0 }
 0x2e1   : > { %v1240_v32 = vmax.f32 %v1200_v28, 0.0 }
 0x2e2   : > { %v1258_v33 = vpack.c.bf16 %v1242_v30, %v1241_v29 }
 0x2e3   : > { %v1257_v34 = vpack.c.bf16 %v1240_v32, %v1239_v31 }
 0x2e5   : > { %2236 = vmatprep.mubr.bf16.mxu1 %v1257_v34 }
 0x2e6   : > { %2237 = vmatmul.mubr.bf16.gmra.mrb[56].mxu1 %v1258_v33 }
 0x381   : > { %v2210_v48 = vpop.f32.mrb[64].mxu0 }
 0x382   : > { %v1373_v36 = vadd.f32 %v2210_v48, %v2654_v35  ;;  %v1364_v37 = vpop.f32.mrb[65].mxu0 }
 0x383   : > { %v1365_v38 = vadd.f32 %v2654_v35, %v1364_v37  ;;  %v2211_v39 = vpop.f32.mrb[66].mxu0 }
 0x384   : > { %1637 = vst [vmem:[%s2661_s14 + $0x10] sm:$0xff] %v1373_v36  ;;  %v1376_v40 = vadd.f32 %v2211_v39, %v2654_v35  ;;  %v1367_v41 = vpop.f32.mrb[67].mxu0 }
 0x385   : > { %1635 = vst [vmem:[%s2661_s14] sm:$0xff] %v1365_v38  ;;  %v1368_v42 = vadd.f32 %v2654_v35, %v1367_v41 }
 0x386   : > { %1638 = vst [vmem:[%s2661_s14 + $0x18] sm:$0xff] %v1376_v40 }
 0x387   : > { %1636 = vst [vmem:[%s2661_s14 + $0x8] sm:$0xff] %v1368_v42 }
 0x389   : > { %v2214_v43 = vpop.f32.mrb[32].mxu1 }
 0x38a   : > { %v1389_v44 = vadd.f32 %v2214_v43, %v2654_v35  ;;  %v1380_v45 = vpop.f32.mrb[33].mxu1 }
 0x38b   : > { %v1381_v46 = vadd.f32 %v2654_v35, %v1380_v45  ;;  %v2215_v47 = vpop.f32.mrb[34].mxu1 }
 0x38c   : > { %1641 = vst [vmem:[%s2661_s14 + $0x30] sm:$0xff] %v1389_v44  ;;  %v1392_v60 = vadd.f32 %v2215_v47, %v2654_v35  ;;  %v1383_v49 = vpop.f32.mrb[35].mxu1 }
 0x38d   : > { %1639 = vst [vmem:[%s2661_s14 + $0x20] sm:$0xff] %v1381_v46  ;;  %v1384_v50 = vadd.f32 %v2654_v35, %v1383_v49 }
 0x38e   : > { %1642 = vst [vmem:[%s2661_s14 + $0x38] sm:$0xff] %v1392_v60 }
 0x38f   : > { %1640 = vst [vmem:[%s2661_s14 + $0x28] sm:$0xff] %v1384_v50 }
 0x391   : > { %v2218_v51 = vpop.f32.mrb[36].mxu1 }
 0x392   : > { %v1405_v52 = vadd.f32 %v2218_v51, %v2654_v35  ;;  %v1396_v53 = vpop.f32.mrb[37].mxu1 }
 0x393   : > { %v1397_v54 = vadd.f32 %v2654_v35, %v1396_v53  ;;  %v2219_v55 = vpop.f32.mrb[38].mxu1 }
 0x394   : > { %1645 = vst [vmem:[%s2661_s14 + $0x50] sm:$0xff] %v1405_v52  ;;  %v1408_v4 = vadd.f32 %v2219_v55, %v2654_v35  ;;  %v1399_v56 = vpop.f32.mrb[39].mxu1 }
 0x395   : > { %1643 = vst [vmem:[%s2661_s14 + $0x40] sm:$0xff] %v1397_v54  ;;  %v1400_v57 = vadd.f32 %v2654_v35, %v1399_v56 }
 0x396   : > { %1646 = vst [vmem:[%s2661_s14 + $0x58] sm:$0xff] %v1408_v4 }
 0x397   : > { %1644 = vst [vmem:[%s2661_s14 + $0x48] sm:$0xff] %v1400_v57 }
 0x399   : > { %v2222_v58 = vpop.f32.mrb[40].mxu1 }
 0x39a   : > { %v1421_v61 = vadd.f32 %v2222_v58, %v2654_v35  ;;  %v1412_v62 = vpop.f32.mrb[41].mxu1 }
 0x39b   : > { %v1413_v63 = vadd.f32 %v2654_v35, %v1412_v62  ;;  %v2223_v0 = vpop.f32.mrb[42].mxu1 }
 0x39c   : > { %1649 = vst [vmem:[%s2661_s14 + $0x70] sm:$0xff] %v1421_v61  ;;  %v1424_v59 = vadd.f32 %v2223_v0, %v2654_v35  ;;  %v1415_v1 = vpop.f32.mrb[43].mxu1 }
 0x39d   : > { %1647 = vst [vmem:[%s2661_s14 + $0x60] sm:$0xff] %v1413_v63  ;;  %v1416_v2 = vadd.f32 %v2654_v35, %v1415_v1 }
 0x39e   : > { %1650 = vst [vmem:[%s2661_s14 + $0x78] sm:$0xff] %v1424_v59 }
 0x39f   : > { %1648 = vst [vmem:[%s2661_s14 + $0x68] sm:$0xff] %v1416_v2 }
 0x3a1   : > { %v2226_v3 = vpop.f32.mrb[44].mxu1 }
 0x3a2   : > { %v1437_v5 = vadd.f32 %v2226_v3, %v2654_v35  ;;  %v1428_v6 = vpop.f32.mrb[45].mxu1 }
 0x3a3   : > { %v1429_v7 = vadd.f32 %v2654_v35, %v1428_v6  ;;  %v2227_v8 = vpop.f32.mrb[46].mxu1 }
 0x3a4   : > { %1653 = vst [vmem:[%s2661_s14 + $0x90] sm:$0xff] %v1437_v5  ;;  %v1440_v9 = vadd.f32 %v2227_v8, %v2654_v35  ;;  %v1431_v10 = vpop.f32.mrb[47].mxu1 }
 0x3a5   : > { %1651 = vst [vmem:[%s2661_s14 + $0x80] sm:$0xff] %v1429_v7  ;;  %v1432_v11 = vadd.f32 %v2654_v35, %v1431_v10 }
 0x3a6   : > { %1654 = vst [vmem:[%s2661_s14 + $0x98] sm:$0xff] %v1440_v9 }
 0x3a7   : > { %1652 = vst [vmem:[%s2661_s14 + $0x88] sm:$0xff] %v1432_v11 }
 0x3a9   : > { %v2230_v12 = vpop.f32.mrb[48].mxu1 }
 0x3aa   : > { %v1453_v13 = vadd.f32 %v2230_v12, %v2654_v35  ;;  %v1444_v14 = vpop.f32.mrb[49].mxu1 }
 0x3ab   : > { %v1445_v15 = vadd.f32 %v2654_v35, %v1444_v14  ;;  %v2231_v16 = vpop.f32.mrb[50].mxu1 }
 0x3ac   : > { %1657 = vst [vmem:[%s2661_s14 + $0xb0] sm:$0xff] %v1453_v13  ;;  %v1456_v17 = vadd.f32 %v2231_v16, %v2654_v35  ;;  %v1447_v18 = vpop.f32.mrb[51].mxu1 }
 0x3ad   : > { %1655 = vst [vmem:[%s2661_s14 + $0xa0] sm:$0xff] %v1445_v15  ;;  %v1448_v19 = vadd.f32 %v2654_v35, %v1447_v18 }
 0x3ae   : > { %1658 = vst [vmem:[%s2661_s14 + $0xb8] sm:$0xff] %v1456_v17 }
 0x3af   : > { %1656 = vst [vmem:[%s2661_s14 + $0xa8] sm:$0xff] %v1448_v19 }
 0x3b1   : > { %v2234_v20 = vpop.f32.mrb[52].mxu1 }
 0x3b2   : > { %v1469_v21 = vadd.f32 %v2234_v20, %v2654_v35  ;;  %v1460_v22 = vpop.f32.mrb[53].mxu1 }
 0x3b3   : > { %v1461_v23 = vadd.f32 %v2654_v35, %v1460_v22  ;;  %v2235_v24 = vpop.f32.mrb[54].mxu1 }
 0x3b4   : > { %1661 = vst [vmem:[%s2661_s14 + $0xd0] sm:$0xff] %v1469_v21  ;;  %v1472_v25 = vadd.f32 %v2235_v24, %v2654_v35  ;;  %v1463_v26 = vpop.f32.mrb[55].mxu1 }
 0x3b5   : > { %1659 = vst [vmem:[%s2661_s14 + $0xc0] sm:$0xff] %v1461_v23  ;;  %v1464_v27 = vadd.f32 %v2654_v35, %v1463_v26 }
 0x3b6   : > { %1662 = vst [vmem:[%s2661_s14 + $0xd8] sm:$0xff] %v1472_v25 }
 0x3b7   : > { %1660 = vst [vmem:[%s2661_s14 + $0xc8] sm:$0xff] %v1464_v27 }
 0x3b9   : > { %v2238_v28 = vpop.f32.mrb[56].mxu1 }
 0x3ba   : > { %v1485_v29 = vadd.f32 %v2238_v28, %v2654_v35  ;;  %v1476_v30 = vpop.f32.mrb[57].mxu1 }
 0x3bb   : > { %v1477_v31 = vadd.f32 %v2654_v35, %v1476_v30  ;;  %v2239_v32 = vpop.f32.mrb[58].mxu1 }
 0x3bc   : > { %1665 = vst [vmem:[%s2661_s14 + $0xf0] sm:$0xff] %v1485_v29  ;;  %v1488_v33 = vadd.f32 %v2239_v32, %v2654_v35  ;;  %v1479_v34 = vpop.f32.mrb[59].mxu1 }
 0x3bd   : > { %1663 = vst [vmem:[%s2661_s14 + $0xe0] sm:$0xff] %v1477_v31  ;;  %v1480_v48 = vadd.f32 %v2654_v35, %v1479_v34 }
 0x3be   : > { %1666 = vst [vmem:[%s2661_s14 + $0xf8] sm:$0xff] %v1488_v33 }
 0x3bf   : > { %1664 = vst [vmem:[%s2661_s14 + $0xe8] sm:$0xff] %v1480_v48 }
 0x3c0 PF: > { %s21_s13 = sadd.s32 1, %s2295_s13  }
 0x3c1   : > { %p18_p4 = scmp.ge.s32.totalorder %s21_s13, 4  }
 0x3c3   :  { %20 = sbr.rel (!%p18_p4) target bundleno = 1 (0x1), region = 98 }

// kernel: a_call__.3
= control target key start
LH: loop header
LB: loop body
LE: loop exit
PB: predicated region body
PF: predicated region fallthrough
CT: control target
= control target key end

     0   :  { %s1318_s13 = smov 0   ;;  %s1483_s0 = inlined_call_operand.vmem [shape: f32[2,8,4], index: 0, kind: input, shape index: {}]   ;;  %s1484_s1 = inlined_call_operand.vmem [shape: f32[1,256], index: 1, kind: input, shape index: {}]   ;;  %s1485_s2 = inlined_call_operand.vmem [shape: f32[1,256], index: 2, kind: input, shape index: {}]   ;;  %s1486_s3 = inlined_call_operand.vmem [shape: bf16[2,256,128], index: 3, kind: input, shape index: {}]   ;;  %s1487_s4 = inlined_call_operand.vmem [shape: bf16[128,128], index: 4, kind: input, shape index: {}]   ;;  %s1488_s5 = inlined_call_operand.vmem [shape: f32[1,128], index: 5, kind: input, shape index: {}]   ;;  %s1489_s6 = inlined_call_operand.vmem [shape: bf16[128,128], index: 6, kind: input, shape index: {}]   ;;  %s1490_s7 = inlined_call_operand.vmem [shape: f32[1,128], index: 7, kind: input, shape index: {}]   ;;  %s1491_s8 = inlined_call_operand.vmem [shape: bf16[128,128], index: 8, kind: input, shape index: {}]   ;;  %s1492_s9 = inlined_call_operand.vmem [shape: f32[1,128], index: 9, kind: input, shape index: {}]   ;;  %s1493_s10 = inlined_call_operand.vmem [shape: f32[2,8,128], index: 10, kind: output, shape index: {}]  }
   0x1 LB: > { %s1016_s14 = sadd.s32 4294967295, %s1254_s13   ;;  %p1020_p0 = scmp.ge.s32.totalorder %s1254_s13, 1  ;;  %s1254_s13 = sphi %s1318_s13, %s20_s13  }
   0x2   : > { %p321_p1 = scmp.lt.s32.totalorder %s1254_s13, 3 }
   0x4   : > { %p322_p2 = pnand %p1020_p0, %p321_p1 }
   0x5   : > { %p362_p3 = scmp.lt.s32.totalorder (!%p322_p2), %s1016_s14, 1  ;;  %v1256_v0 = vmov (!%p322_p2), 0   ;;  %v1257_v1 = vmov (!%p322_p2), 1   ;;  %v1258_v7 = vmov (!%p322_p2), 2   ;;  %v1259_v8 = vmov (!%p322_p2), 3   ;;  %v1222_v40 = vld [vmem:[%s1487_s4] sm:$0xff] (!%p322_p2)  }
   0x6   : > { %325 = sbr.rel (%p322_p2) target bundleno = 1029 (0x405), region = 60  ;;  %1201 = vset.pattern.permute.xlu0 (!%p322_p2), %v1256_v0  ;;  %1203 = vset.pattern.permute.xlu1 (!%p322_p2), %v1257_v1  ;;  %v1260_v14 = vmov (!%p322_p2), 0.0   ;;  %v380_v22 = vlaneseq (!%p322_p2)  ;;  %v377_v25 = vld [vmem:[%s1484_s1] sm:$0x3] (!%p322_p2)  ;;  %v1261_v38 = vmov (!%p322_p2), 1.0|1.0  }
   0x7   : > { %1126 = vmatprep.subr.bf16.mxu1 (!%p322_p2), %v1260_v14  ;;  %v378_v29 = vld [vmem:[%s1485_s2] sm:$0x3] (!%p322_p2)  ;;  %v1223_v41 = vld [vmem:[%s1487_s4 + $0x8] sm:$0xff] (!%p322_p2)   ;;  %v1224_v42 = vld [vmem:[%s1487_s4 + $0x10] sm:$0xff] (!%p322_p2)  }
   0x8   : > { %v381_v23 = vshrl.u32 (!%p322_p2), %v380_v22, 7  ;;  %1127 = vmatpush3.bf16.msra.mxu1 (!%p322_p2), %v1222_v40  ;;  %v1225_v43 = vld [vmem:[%s1487_s4 + $0x18] sm:$0xff] (!%p322_p2)   ;;  %v1226_v44 = vld [vmem:[%s1487_s4 + $0x20] sm:$0xff] (!%p322_p2)   ;;  %v1227_v45 = vld [vmem:[%s1487_s4 + $0x28] sm:$0xff] (!%p322_p2)  }
   0x9   : > { %1128 = vmatprep.subr.bf16.mxu1 (!%p322_p2), %v1260_v14  ;;  %v1228_v46 = vld [vmem:[%s1487_s4 + $0x30] sm:$0xff] (!%p322_p2)   ;;  %v1229_v47 = vld [vmem:[%s1487_s4 + $0x38] sm:$0xff] (!%p322_p2)   ;;  %v1230_v48 = vld [vmem:[%s1489_s6] sm:$0xff] (!%p322_p2)  }
   0xa   : > { %v382_v24 = vsub.s32 (!%p322_p2), 0, %v381_v23  ;;  %v386_v26 = vsub.s32 (!%p322_p2), 1, %v381_v23  ;;  %v1231_v49 = vld [vmem:[%s1489_s6 + $0x8] sm:$0xff] (!%p322_p2)   ;;  %v1232_v50 = vld [vmem:[%s1489_s6 + $0x10] sm:$0xff] (!%p322_p2)   ;;  %v1233_v51 = vld [vmem:[%s1489_s6 + $0x18] sm:$0xff] (!%p322_p2)  }
   0xb   : > { %v1234_v52 = vld [vmem:[%s1489_s6 + $0x20] sm:$0xff] (!%p322_p2)   ;;  %v1235_v53 = vld [vmem:[%s1489_s6 + $0x28] sm:$0xff] (!%p322_p2)   ;;  %v1236_v0 = vld [vmem:[%s1489_s6 + $0x30] sm:$0xff] (!%p322_p2)  }
   0xc   : > { %v383_v30 = vrot.slane (!%p322_p2), %v377_v25, %v382_v24  ;;  %v387_v31 = vrot.slane (!%p322_p2), %v377_v25, %v386_v26  ;;  %v409_v32 = vrot.slane (!%p322_p2), %v378_v29, %v382_v24  ;;  %v413_v35 = vrot.slane (!%p322_p2), %v378_v29, %v386_v26  ;;  %1129 = vmatpush3.bf16.msra.mxu1 (!%p322_p2), %v1223_v41  ;;  %v1237_v1 = vld [vmem:[%s1489_s6 + $0x38] sm:$0xff] (!%p322_p2)  }
   0xd   : > { %s1495_s14 = smov (!%p362_p3, %s1016_s14), 1  ;;  %1130 = vmatprep.subr.bf16.mxu1 %v1260_v14 }
   0xe   : > { %s1021_s15 = sshll.u32 %s1495_s14, 3  ;;  %s1076_s16 = sshll.u32 %s1495_s14, 7 }
   0xf   : > { %s365_s19 = scalar_lea.vmem %s1483_s0, %s1021_s15  ;;  %s1338_s22 = scalar_lea.vmem %s1486_s3, %s1076_s16 }
  0x10   : > { %v376_v2 = vld [vmem:[%s365_s19] sm:$0xff]  ;;  %v1208_v5 = vld [vmem:[%s1338_s22 + $0x48] sm:$0xff]   ;;  %v1210_v9 = vld [vmem:[%s1338_s22 + $0x50] sm:$0xff]   ;;  %1131 = vmatpush3.bf16.msra.mxu1 %v1224_v42  ;;  %s374_s12 = scalar_lea.vmem %s1493_s10, %s1021_s15 }
  0x11   : > { %392 = vperm.xlu0 %1201, %v376_v2   ;;  %417 = vperm.xlu1 %1203, %v376_v2   ;;  %v1206_v3 = vld [vmem:[%s1338_s22 + $0x40] sm:$0xff]   ;;  %v1209_v6 = vld [vmem:[%s1338_s22 + $0x8] sm:$0xff]   ;;  %v1211_v10 = vld [vmem:[%s1338_s22 + $0x10] sm:$0xff]  }
  0x12   : > { %v1207_v4 = vld [vmem:[%s1338_s22] sm:$0xff]   ;;  %1077 = vmatprep.subr.bf16.mxu0 %v1206_v3  ;;  %v1212_v11 = vld [vmem:[%s1338_s22 + $0x58] sm:$0xff]   ;;  %v1216_v16 = vld [vmem:[%s1338_s22 + $0x68] sm:$0xff]   ;;  %1132 = vmatprep.subr.bf16.mxu1 %v1260_v14 }
  0x13   : > { %1078 = vmatpush3.bf16.msra.mxu0 %v1207_v4  ;;  %v1213_v12 = vld [vmem:[%s1338_s22 + $0x18] sm:$0xff]   ;;  %v1214_v13 = vld [vmem:[%s1338_s22 + $0x60] sm:$0xff]   ;;  %v1217_v17 = vld [vmem:[%s1338_s22 + $0x28] sm:$0xff]  }
  0x14   : > { %1079 = vmatprep.subr.bf16.mxu0 %v1208_v5  ;;  %v1215_v15 = vld [vmem:[%s1338_s22 + $0x20] sm:$0xff]   ;;  %v1218_v18 = vld [vmem:[%s1338_s22 + $0x70] sm:$0xff]   ;;  %v1220_v20 = vld [vmem:[%s1338_s22 + $0x78] sm:$0xff]   ;;  %1133 = vmatpush3.bf16.msra.mxu1 %v1225_v43 }
  0x15   : > { %1202 = vset.pattern.permute.xlu0 %v1258_v7  ;;  %1204 = vset.pattern.permute.xlu1 %v1259_v8  ;;  %v1219_v19 = vld [vmem:[%s1338_s22 + $0x30] sm:$0xff]   ;;  %v1221_v21 = vld [vmem:[%s1338_s22 + $0x38] sm:$0xff]   ;;  %v1239_v3 = vld [vmem:[%s1491_s8 + $0x8] sm:$0xff]  }
  0x16   : > { %398 = vperm.xlu0 %1202, %v376_v2   ;;  %425 = vperm.xlu1 %1204, %v376_v2   ;;  %v1238_v2 = vld [vmem:[%s1491_s8] sm:$0xff]   ;;  %v1240_v4 = vld [vmem:[%s1491_s8 + $0x10] sm:$0xff]   ;;  %v1241_v5 = vld [vmem:[%s1491_s8 + $0x18] sm:$0xff]  }
  0x17   : > { %1080 = vmatpush3.bf16.msra.mxu0 %v1209_v6  ;;  %1134 = vmatprep.subr.bf16.mxu1 %v1260_v14  ;;  %v1242_v6 = vld [vmem:[%s1491_s8 + $0x20] sm:$0xff]   ;;  %v1243_v7 = vld [vmem:[%s1491_s8 + $0x28] sm:$0xff]  }
  0x18   : > { %1081 = vmatprep.subr.bf16.mxu0 %v1210_v9  ;;  %1135 = vmatpush3.bf16.msra.mxu1 %v1226_v44 }
  0x19   : > { %1136 = vmatprep.subr.bf16.mxu1 %v1260_v14 }
  0x1a   : > { %1205 = vset.pattern.permute.xlu0 %v1259_v8  ;;  %v1047_v8 = vld [vmem:[%s1488_s5] ss:$0 sm:$0xff] }
  0x1b   : > { %1082 = vmatpush3.bf16.msra.mxu0 %v1211_v10 }
  0x1c   : > { %1083 = vmatprep.subr.bf16.mxu0 %v1212_v11  ;;  %1137 = vmatpush3.bf16.msra.mxu1 %v1227_v45 }
  0x1d   : > { %1138 = vmatprep.subr.bf16.mxu1 %v1260_v14 }
  0x1f   : > { %1084 = vmatpush3.bf16.msra.mxu0 %v1213_v12 }
  0x20   : > { %1085 = vmatprep.subr.bf16.mxu0 %v1214_v13  ;;  %1139 = vmatpush3.bf16.msra.mxu1 %v1228_v46 }
  0x21   : > { %1140 = vmatprep.subr.bf16.mxu1 %v1260_v14 }
  0x23   : > { %1086 = vmatpush3.bf16.msra.mxu0 %v1215_v15 }
  0x24   : > { %1087 = vmatprep.subr.bf16.mxu0 %v1216_v16  ;;  %1141 = vmatpush3.bf16.msra.mxu1 %v1229_v47 }
  0x25   : > { %1166 = vmatprep.subr.bf16.mxu1 %v1260_v14 }
  0x27   : > { %1088 = vmatpush3.bf16.msra.mxu0 %v1217_v17  ;;  %v1244_v17 = vld [vmem:[%s1491_s8 + $0x30] sm:$0xff]  }
  0x28   : > { %1089 = vmatprep.subr.bf16.mxu0 %v1218_v18  ;;  %v1245_v18 = vld [vmem:[%s1491_s8 + $0x38] sm:$0xff]  }
  0x2b   : > { %1090 = vmatpush3.bf16.msra.mxu0 %v1219_v19  ;;  %v1056_v19 = vld [vmem:[%s1490_s7] ss:$0 sm:$0xff] }
  0x2c   : > { %1091 = vmatprep.subr.bf16.mxu0 %v1220_v20 }
  0x2f   : > { %1092 = vmatpush3.bf16.msra.mxu0 %v1221_v21 }
  0x30   : > { %1146 = vmatprep.subr.bf16.mxu0 %v1260_v14 }
  0x90   : > { %v393_v27 = vpop.permute.xlu0 %392  ;;  %v418_v28 = vpop.permute.xlu1 %417 }
  0x91   : > { %vm395_vm0 = vcmp.ge.f32.partialorder %v383_v30, %v393_v27  ;;  %vm396_vm3 = vcmp.ge.f32.partialorder %v387_v31, %v393_v27  ;;  %vm420_vm6 = vcmp.ge.f32.partialorder %v409_v32, %v418_v28  ;;  %vm421_vm10 = vcmp.ge.f32.partialorder %v413_v35, %v418_v28 }
  0x95   : > { %v399_v33 = vpop.permute.xlu0 %398  ;;  %v426_v34 = vpop.permute.xlu1 %425 }
  0x96   : > { %vm401_vm1 = vcmp.le.f32.partialorder %v383_v30, %v399_v33  ;;  %vm402_vm2 = vcmp.le.f32.partialorder %v387_v31, %v399_v33  ;;  %vm428_vm5 = vcmp.le.f32.partialorder %v409_v32, %v426_v34  ;;  %vm429_vm9 = vcmp.le.f32.partialorder %v413_v35, %v426_v34 }
  0x97   : > { %vm403_vm4 = vmand %vm395_vm0, %vm401_vm1  ;;  %vm1262_vm0 = vmmov 0  }
  0x98   : > { %vm404_vm7 = vmand %vm396_vm3, %vm402_vm2  ;;  %1142 = vmatprep.mubr.msk.bf16.mxu1 %vm1262_vm0, %v1260_v14 }
  0x99   : > { %vm422_vm8 = vmand %vm403_vm4, %vm420_vm6 }
  0x9a   : > { %vm430_vm11 = vmand %vm422_vm8, %vm428_vm5 }
  0x9b   : > { %vm423_vm12 = vmand %vm404_vm7, %vm421_vm10  ;;  %v1025_v36 = vsel %vm430_vm11, 1.0, %v1260_v14 }
  0x9c   : > { %vm431_vm13 = vmand %vm423_vm12, %vm429_vm9 }
  0x9d   : > { %vm1043_vm14 = vmpackc.low %vm431_vm13, %vm431_vm13  ;;  %v1026_v37 = vsel %vm431_vm13, 1.0, %v1260_v14 }
  0x9e   : > { %1044 = vmatprep.mubr.msk.bf16.mxu0 %vm1043_vm14, %v1261_v38  ;;  %vm1045_vm15 = vmpackc.low %vm430_vm11, %vm430_vm11  ;;  %v436_v39 = vadd.f32 %v1026_v37, %v1025_v36 }
  0x9f   : > { %1046 = vmatmul.mubr.msk.bf16.vlgmr.msra.gmra.mrb[0].mxu0 %vm1045_vm15, %v1261_v38 }
  0xa0   : > { %437 = vadd.xlane.f32.xlu1 %v436_v39  ;;  %1162 = vmatprep.mubr.msk.bf16.mxu0 %vm1262_vm0, %v1260_v14 }
  0xa1   : > { %1147 = vmatpush3.bf16.msra.mxu0 %v1230_v48 }
  0xa2   : > { %1148 = vmatprep.subr.bf16.mxu0 %v1260_v14 }
  0xa5   : > { %1149 = vmatpush3.bf16.msra.mxu0 %v1231_v49 }
  0xa6   : > { %1150 = vmatprep.subr.bf16.mxu0 %v1260_v14 }
  0xa9   : > { %1151 = vmatpush3.bf16.msra.mxu0 %v1232_v50 }
  0xaa   : > { %1152 = vmatprep.subr.bf16.mxu0 %v1260_v14 }
  0xad   : > { %1153 = vmatpush3.bf16.msra.mxu0 %v1233_v51 }
  0xae   : > { %1154 = vmatprep.subr.bf16.mxu0 %v1260_v14 }
  0xb1   : > { %1155 = vmatpush3.bf16.msra.mxu0 %v1234_v52 }
  0xb2   : > { %1156 = vmatprep.subr.bf16.mxu0 %v1260_v14 }
  0xb5   : > { %1157 = vmatpush3.bf16.msra.mxu0 %v1235_v53 }
  0xb6   : > { %1158 = vmatprep.subr.bf16.mxu0 %v1260_v14 }
  0xb9   : > { %1159 = vmatpush3.bf16.msra.mxu0 %v1236_v0 }
  0xba   : > { %1160 = vmatprep.subr.bf16.mxu0 %v1260_v14 }
  0xbd   : > { %1161 = vmatpush3.bf16.msra.mxu0 %v1237_v1 }
 0x12d   : > { %v438_v54 = vpop.xlane.xlu1 %437 }
 0x12e   : > { %v439_v55 = vmax.f32 %v438_v54, 1.0 }
 0x130   : > { %1246 = vrcp.f32 %v439_v55 }
 0x13a   : > { %v1247_v60 = vpop.eup %1246 }
 0x172   : > { %v1093_v56 = vpop.f32.mrb[0].mxu0 }
 0x173   : > { %v1094_v57 = vpop.f32.mrb[1].mxu0 }
 0x174   : > { %v1095_v58 = vadd.f32 %v1094_v57, %v1093_v56  ;;  %v1096_v59 = vpop.f32.mrb[2].mxu0 }
 0x175   : > { %v1097_v61 = vpop.f32.mrb[3].mxu0 }
 0x176   : > { %v611_v62 = vmul.f32 %v1247_v60, %v1095_v58 }
 0x178   : > { %v612_v63 = vpack.c.bf16 %v611_v62, %v611_v62 }
 0x17a   : > { %1143 = vmatmul.mubr.bf16.vlgmr.msra.gmra.mrb[0].mxu1 %v612_v63 }
 0x17b   : > { %1182 = vmatprep.mubr.msk.bf16.mxu1 %vm1262_vm0, %v1260_v14  ;;  %1167 = vmatpush3.bf16.msra.mxu1 %v1238_v2 }
 0x17c   : > { %1168 = vmatprep.subr.bf16.mxu1 %v1260_v14 }
 0x17f   : > { %1169 = vmatpush3.bf16.msra.mxu1 %v1239_v3 }
 0x180   : > { %1170 = vmatprep.subr.bf16.mxu1 %v1260_v14 }
 0x183   : > { %1171 = vmatpush3.bf16.msra.mxu1 %v1240_v4 }
 0x184   : > { %1172 = vmatprep.subr.bf16.mxu1 %v1260_v14 }
 0x187   : > { %1173 = vmatpush3.bf16.msra.mxu1 %v1241_v5 }
 0x188   : > { %1174 = vmatprep.subr.bf16.mxu1 %v1260_v14 }
 0x18b   : > { %1175 = vmatpush3.bf16.msra.mxu1 %v1242_v6 }
 0x18c   : > { %1176 = vmatprep.subr.bf16.mxu1 %v1260_v14 }
 0x18f   : > { %1177 = vmatpush3.bf16.msra.mxu1 %v1243_v7 }
 0x190   : > { %1178 = vmatprep.subr.bf16.mxu1 %v1260_v14 }
 0x193   : > { %1179 = vmatpush3.bf16.msra.mxu1 %v1244_v17 }
 0x194   : > { %1180 = vmatprep.subr.bf16.mxu1 %v1260_v14  ;;  %v1065_v14 = vld [vmem:[%s1492_s9] ss:$0 sm:$0xff] }
 0x197   : > { %1181 = vmatpush3.bf16.msra.mxu1 %v1245_v18 }
 0x24d   : > { %v718_v9 = vpop.f32.mrb[0].mxu1 }
 0x24e   : > { %v719_v10 = vadd.f32 %v1047_v8, %v718_v9  ;;  %v1144_v11 = vpop.f32.mrb[1].mxu1 }
 0x24f   : > { %v721_v12 = vpop.f32.mrb[2].mxu1 }
 0x250   : > { %v724_v13 = vmax.f32 %v719_v10, 0.0  ;;  %v1145_v15 = vpop.f32.mrb[3].mxu1 }
 0x252   : > { %v725_v16 = vpack.c.bf16 %v724_v13, %v724_v13 }
 0x254   : > { %1163 = vmatmul.mubr.bf16.vlgmr.msra.gmra.mrb[4].mxu0 %v725_v16 }
 0x327   : > { %v831_v20 = vpop.f32.mrb[4].mxu0 }
 0x328   : > { %v832_v21 = vadd.f32 %v1056_v19, %v831_v20  ;;  %v1164_v22 = vpop.f32.mrb[5].mxu0 }
 0x329   : > { %v834_v23 = vpop.f32.mrb[6].mxu0 }
 0x32a   : > { %v837_v24 = vmax.f32 %v832_v21, 0.0  ;;  %v1165_v25 = vpop.f32.mrb[7].mxu0 }
 0x32c   : > { %v838_v26 = vpack.c.bf16 %v837_v24, %v837_v24 }
 0x32e   : > { %1183 = vmatmul.mubr.bf16.vlgmr.msra.gmra.mrb[4].mxu1 %v838_v26 }
 0x401   : > { %v944_v27 = vpop.f32.mrb[4].mxu1 }
 0x402   : > { %v945_v28 = vadd.f32 %v1065_v14, %v944_v27  ;;  %v1184_v29 = vpop.f32.mrb[5].mxu1 }
 0x403   : > { %v947_v30 = vpop.f32.mrb[6].mxu1 }
 0x404   : > { %950 = vst [vmem:[%s374_s12] sm:$0xff] %v945_v28  ;;  %v1185_v31 = vpop.f32.mrb[7].mxu1 }
 0x405 PF: > { %s20_s13 = sadd.s32 1, %s1254_s13  }
 0x406   : > { %p17_p4 = scmp.ge.s32.totalorder %s20_s13, 4  }
 0x408   :  { %19 = sbr.rel (!%p17_p4) target bundleno = 1 (0x1), region = 93 }

</bundles_post_ra>
